<compile_context>
chip_gen: v5e
topology: v5e:2x2
jax: 0.10.0
libtpu: 0.0.40
codegen_flags: <defaults>
</compile_context>

<pallas_src>
import jax
import jax.numpy as jnp
from jax.experimental import pallas as pl
from jax.experimental.pallas import tpu as pltpu

D = 256  # feature dim fixed by the module (nn.Linear(256, ...))


def _round_up(x, m):
    return (x + m - 1) // m * m


def _bahdanau_kernel(qp_ref, mem_ref, v_ref, o_ref):
    # qp_ref : (B_TILE, D)         pre-projected query rows (query @ Wq^T)
    # mem_ref: (B_TILE, T_TILE, D) memory tile
    # v_ref  : (1, D)              v.weight row
    # o_ref  : (B_TILE, T_TILE)    lane-dense attention scores
    qp = qp_ref[...].astype(jnp.float32)                  # (B_TILE, D)
    v_row = v_ref[...].astype(jnp.float32)                # (1, D)
    mem = mem_ref[...].astype(jnp.float32)                # (B_TILE, T_TILE, D)
    s = jnp.tanh(qp[:, None, :] + mem)                    # broadcast over T (sublanes)
    scores = jnp.sum(s * v_row[None, :, :], axis=-1)      # (B_TILE, T_TILE), lane reduce
    o_ref[...] = scores.astype(o_ref.dtype)


def bahdanau_attention(query, memory, wq, vw, *, b_tile=8, t_tile=512):
    """query: (B, D) or (B, 1, D); memory: (B, T, D);
    wq: (D, D) torch-style weight (out, in); vw: (1, D) torch-style weight."""
    query2d = query[:, 0, :] if query.ndim == 3 else query
    B, T, d = memory.shape
    assert d == D and query2d.shape == (B, D)

    # Hoist the query projection: one full-efficiency XLA matmul, done once.
    qp = jnp.dot(query2d, wq.T, precision=jax.lax.Precision.HIGHEST)  # (B, D)

    # Tile sizes: full sublanes on B, lane-aligned (multiple of 128) on T.
    B_TILE = min(b_tile, _round_up(B, 8))
    T_TILE = min(t_tile, _round_up(T, 128))
    B_pad = _round_up(B, B_TILE)
    T_pad = _round_up(T, T_TILE)

    qp_p = jnp.pad(qp, ((0, B_pad - B), (0, 0))) if B_pad != B else qp
    mem_p = memory
    if B_pad != B or T_pad != T:
        mem_p = jnp.pad(memory, ((0, B_pad - B), (0, T_pad - T), (0, 0)))

    grid = (B_pad // B_TILE, T_pad // T_TILE)

    out = pl.pallas_call(
        _bahdanau_kernel,
        out_shape=jax.ShapeDtypeStruct((B_pad, T_pad), query2d.dtype),
        grid_spec=pltpu.PrefetchScalarGridSpec(
            num_scalar_prefetch=0,
            grid=grid,
            in_specs=[
                pl.BlockSpec((B_TILE, D), lambda bi, ti: (bi, 0)),              # qp
                pl.BlockSpec((B_TILE, T_TILE, D), lambda bi, ti: (bi, ti, 0)),  # memory
                pl.BlockSpec((1, D), lambda bi, ti: (0, 0)),                    # v row
            ],
            out_specs=pl.BlockSpec((B_TILE, T_TILE), lambda bi, ti: (bi, ti)),
        ),
        compiler_params=pltpu.CompilerParams(
            dimension_semantics=("parallel", "parallel")),
    )(qp_p, mem_p, vw)

    # Drop padding and restore the (B, T, 1) layout of the torch module.
    return out[:B, :T][..., None]


def bahdanau_reference(query, memory, wq, vw):
    if query.ndim == 2:
        query = query[:, None, :]
    qp = jnp.einsum("bqd,ed->bqe", query, wq,
                    precision=jax.lax.Precision.HIGHEST)   # query_layer (bias=False)
    s = jnp.tanh(qp + memory)
    return jnp.einsum("btd,od->bto", s, vw,
                      precision=jax.lax.Precision.HIGHEST)  # v (bias=False)


if __name__ == "__main__":
    key = jax.random.PRNGKey(0)
    k_q, k_m, k_wq, k_v = jax.random.split(key, 4)

    B, T = 2, 8
    query = jax.random.normal(k_q, (B, 1, D), dtype=jnp.float32)
    memory = jax.random.normal(k_m, (B, T, D), dtype=jnp.float32)

    # nn.Linear-style uniform(-1/sqrt(256), 1/sqrt(256)) init, bias=False.
    bound = 1.0 / jnp.sqrt(jnp.float32(D))
    wq = jax.random.uniform(k_wq, (D, D), minval=-bound, maxval=bound,
                            dtype=jnp.float32)   # query_layer.weight (out, in)
    vw = jax.random.uniform(k_v, (1, D), minval=-bound, maxval=bound,
                            dtype=jnp.float32)   # v.weight (1, 256)

    out = bahdanau_attention(query, memory, wq, vw)
    out = jax.block_until_ready(out)

    ref = bahdanau_reference(query, memory, wq, vw)
    assert out.shape == (B, T, 1)
    assert jnp.allclose(out, ref, atol=1e-4, rtol=1e-4)

    print("KERNEL_OK")
</pallas_src>

<mosaic_0001>
module attributes {stable_mosaic.version = 11 : i64} {
  func.func @_bahdanau_kernel(%arg0: i32, %arg1: i32, %arg2: memref<8x256xf32, #tpu.memory_space<vmem>>, %arg3: memref<8x128x256xf32, #tpu.memory_space<vmem>>, %arg4: memref<1x256xf32, #tpu.memory_space<vmem>>, %arg5: memref<8x128xf32, #tpu.memory_space<vmem>>) attributes {dimension_semantics = [#tpu.dimension_semantics<parallel>, #tpu.dimension_semantics<parallel>], iteration_bounds = array<i64: 1, 1>, scalar_prefetch = 0 : i64, scratch_operands = 0 : i64, tpu.core_type = #tpu.core_type<tc>, window_params = [{transform_indices = @transform_0, window_bounds = array<i64: 8, 256>}, {transform_indices = @transform_1, window_bounds = array<i64: 8, 128, 256>}, {pipeline_mode = #tpu.pipeline_mode<synchronous>, transform_indices = @transform_2, window_bounds = array<i64: 1, 256>}, {transform_indices = @transform_3, window_bounds = array<i64: 8, 128>}]} {
    %c0 = arith.constant 0 : index
    %c0_0 = arith.constant 0 : index
    %0 = vector.load %arg2[%c0, %c0_0] : memref<8x256xf32, #tpu.memory_space<vmem>>, vector<8x256xf32>
    %c0_1 = arith.constant 0 : index
    %c0_2 = arith.constant 0 : index
    %1 = vector.load %arg4[%c0_1, %c0_2] : memref<1x256xf32, #tpu.memory_space<vmem>>, vector<1x256xf32>
    %c0_3 = arith.constant 0 : index
    %c0_4 = arith.constant 0 : index
    %c0_5 = arith.constant 0 : index
    %2 = vector.load %arg3[%c0_3, %c0_4, %c0_5] : memref<8x128x256xf32, #tpu.memory_space<vmem>>, vector<8x128x256xf32>
    %3 = vector.shape_cast %0 : vector<8x256xf32> to vector<8x1x256xf32>
    %4 = vector.broadcast %3 : vector<8x1x256xf32> to vector<8x128x256xf32>
    %5 = arith.addf %4, %2 : vector<8x128x256xf32>
    %6 = math.tanh %5 : vector<8x128x256xf32>
    %7 = vector.shape_cast %1 : vector<1x256xf32> to vector<1x1x256xf32>
    %8 = vector.broadcast %7 : vector<1x1x256xf32> to vector<8x128x256xf32>
    %9 = arith.mulf %6, %8 : vector<8x128x256xf32>
    %cst = arith.constant dense<0.000000e+00> : vector<8x128xf32>
    %10 = vector.multi_reduction <add>, %9, %cst [2] : vector<8x128x256xf32> to vector<8x128xf32>
    %c0_6 = arith.constant 0 : index
    %c0_7 = arith.constant 0 : index
    %11 = vector.load %arg5[%c0_6, %c0_7] : memref<8x128xf32, #tpu.memory_space<vmem>>, vector<8x128xf32>
    tpu.vector_store %arg5[%c0_6, %c0_7], %10 {strides = array<i32>} : memref<8x128xf32, #tpu.memory_space<vmem>>, vector<8x128xf32>,
    return
  }
  func.func @transform_0(%arg0: i32, %arg1: i32) -> (i32, i32) {
    %c0_i32 = arith.constant 0 : i32
    %c0_i32_0 = arith.constant 0 : i32
    return %arg0, %c0_i32 : i32, i32
  }
  func.func @transform_1(%arg0: i32, %arg1: i32) -> (i32, i32, i32) {
    %c0_i32 = arith.constant 0 : i32
    %c0_i32_0 = arith.constant 0 : i32
    return %arg0, %arg1, %c0_i32 : i32, i32, i32
  }
  func.func @transform_2(%arg0: i32, %arg1: i32) -> (i32, i32) {
    %c0_i32 = arith.constant 0 : i32
    %c0_i32_0 = arith.constant 0 : i32
    %c0_i32_1 = arith.constant 0 : i32
    return %c0_i32, %c0_i32_0 : i32, i32
  }
  func.func @transform_3(%arg0: i32, %arg1: i32) -> (i32, i32) {
    %c0_i32 = arith.constant 0 : i32
    return %arg0, %arg1 : i32, i32
  }
}

</mosaic_0001>

<bundles_post_ra>
// kernel: tpu_custom_call.1
= control target key start
LH: loop header
LB: loop body
LE: loop exit
PB: predicated region body
PF: predicated region fallthrough
CT: control target
= control target key end

     0   :  { %8 = vsyncpa [#allocation3], 0  ;;  %s3532_s0 = inlined_call_operand.hbm [shape: f32[8,256], index: 0, kind: input, shape index: {}]   ;;  %s3533_s1 = inlined_call_operand.hbm [shape: f32[8,128,256], index: 1, kind: input, shape index: {}]   ;;  %s3534_s2 = inlined_call_operand.hbm [shape: f32[1,256], index: 2, kind: input, shape index: {}]   ;;  %s3535_s3 = inlined_call_operand.hbm [shape: f32[8,128], index: 3, kind: output, shape index: {}]  }
   0x1   :  { %9 = vsyncpa [#allocation6], 0  ;;  %s26_s14 = sshll.u32 %s3533_s1, 4  ;;  %s27_s14 = int_to_ptr.hbm [resolvable:$true] %s26_s14 }
   0x2   :  { %10 = vsyncpa [#allocation4], 0  ;;  %s2590_s15 = smov [#allocation5]   ;;  %s16_s19 = sshll.u32 %s3532_s0, 4  ;;  %s17_s19 = int_to_ptr.hbm [resolvable:$true] %s16_s19 }
   0x3   :  { %s28_s16 = sshll.u32 %s2590_s15, 4  ;;  %s2591_s20 = smov 256   ;;  %s29_s16 = int_to_ptr.vmem [resolvable:$true] %s28_s16 }
   0x4   :  { %s2592_s21 = smov 16   ;;  %s2593_s22 = smov [#allocation2]  }
   0x5   :  { %34 = dma.hbm_to_vmem [thread:$0]  %s27_s14, 32768, %s29_s16, [#allocation6], %s2591_s20, %s2591_s20, %s2592_s21  }
   0x6   :  { %s18_s23 = sshll.u32 %s2593_s22, 4  ;;  %s40_s26 = sshll.u32 %s3534_s2, 4  ;;  %s19_s23 = int_to_ptr.vmem [resolvable:$true] %s18_s23  ;;  %s41_s26 = int_to_ptr.hbm [resolvable:$true] %s40_s26 }
   0x7   :  { %21 = dma.hbm_to_vmem [thread:$0]  %s17_s19, 256, %s19_s23, [#allocation3]  }
   0x8   :  { %s2594_s1 = smov [#allocation7]  }
   0x9   :  { %s42_s27 = sshll.u32 %s2594_s1, 4  ;;  %s43_s27 = int_to_ptr.vmem [resolvable:$true] %s42_s27 }
   0xa   :  { %45 = dma.hbm_to_vmem [thread:$0]  %s41_s26, 32, %s43_s27, [#allocation6]  }
   0xb   :  { %2584 = dma.done.wait [#allocation3], 256  }
   0xc   :  { %2585 = vsyncadd [#allocation3], 4294967040 }
   0xd   :  { %2586 = dma.done.wait [#allocation6], 32800  }
   0xe   :  { %2587 = vsyncadd [#allocation6], 4294934496  ;;  %v2625_v0 = vld [vmem:[#allocation2] sm:$0xff]  ;;  %v59_v1 = vld [vmem:[#allocation2 + $0x8] sm:$0xff]  ;;  %vm320_vm0 = vcmask 1040384   ;;  %vm322_vm1 = vcmask 1041409  }
   0xf   :  { %v2627_v2 = vrot.slane %v59_v1, 7  ;;  %v65_v3 = vld [vmem:[#allocation5 + $0x20] sm:$0xff]  ;;  %v66_v4 = vld [vmem:[#allocation5 + $0x28] sm:$0xff]  ;;  %v67_v16 = vld [vmem:[#allocation5 + $0x30] sm:$0xff]  ;;  %vm3538_vm2 = vcmask 1042434   ;;  %vm3537_vm3 = vcmask 1043459  }
  0x10   :  { %v61_v6 = vld [vmem:[#allocation5] sm:$0xff]  ;;  %v62_v9 = vld [vmem:[#allocation5 + $0x8] sm:$0xff]  ;;  %v68_v19 = vld [vmem:[#allocation5 + $0x38] sm:$0xff]  ;;  %vm1665_vm4 = vcmask 130112   ;;  %vm1669_vm5 = vcmask 195712   ;;  %vm1673_vm6 = vcmask 261312  }
  0x11   :  { %v321_v5 = vsel %vm320_vm0, %v2625_v0, %v2627_v2  ;;  %v69_v10 = vld [vmem:[#allocation5 + $0x40] sm:$0xff]  ;;  %v70_v14 = vld [vmem:[#allocation5 + $0x48] sm:$0xff]  ;;  %v63_v21 = vld [vmem:[#allocation5 + $0x10] sm:$0xff]  ;;  %vm3539_vm7 = vcmask 326912   ;;  %vm1681_vm8 = vcmask 392512   ;;  %vm1685_vm9 = vcmask 458112  }
  0x12   :  { %v2631_v7 = vperm.slane %v321_v5, 0  ;;  %v2633_v8 = vperm.slane %v321_v5, 1  ;;  %v60_v17 = vld [vmem:[#allocation7] sm:$0x3]  ;;  %v64_v23 = vld [vmem:[#allocation5 + $0x18] sm:$0xff]  ;;  %v71_v26 = vld [vmem:[#allocation5 + $0x50] sm:$0xff] }
  0x13   :  { %v2642_v24 = vperm.slane %v60_v17, 0  ;;  %v2645_v27 = vperm.slane %v60_v17, 1  ;;  %v72_v29 = vld [vmem:[#allocation5 + $0x58] sm:$0xff]  ;;  %v75_v31 = vld [vmem:[#allocation5 + $0x70] sm:$0xff]  ;;  %v73_v38 = vld [vmem:[#allocation5 + $0x60] sm:$0xff]  ;;  %vm1689_vm10 = vcmask 523712  }
  0x14   :  { %v379_v11 = vadd.f32 %v2631_v7, %v65_v3  ;;  %v380_v12 = vadd.f32 %v2633_v8, %v66_v4  ;;  %v375_v13 = vadd.f32 %v2631_v7, %v61_v6  ;;  %v376_v15 = vadd.f32 %v2633_v8, %v62_v9  ;;  %v76_v34 = vld [vmem:[#allocation5 + $0x78] sm:$0xff]  ;;  %v74_v42 = vld [vmem:[#allocation5 + $0x68] sm:$0xff]  ;;  %v77_v46 = vld [vmem:[#allocation5 + $0x80] sm:$0xff]  ;;  %s2595_s0 = smov [#allocation8]   ;;  %s1957_s30 = sshll.u32 %s3535_s3, 4  ;;  %s1958_s30 = int_to_ptr.hbm [resolvable:$true] %s1957_s30 }
  0x15   :  { %v383_v18 = vadd.f32 %v2631_v7, %v69_v10  ;;  %v384_v20 = vadd.f32 %v2633_v8, %v70_v14  ;;  %v381_v22 = vadd.f32 %v2631_v7, %v67_v16  ;;  %v382_v25 = vadd.f32 %v2633_v8, %v68_v19  ;;  %v78_v51 = vld [vmem:[#allocation5 + $0x88] sm:$0xff]  ;;  %v81_v55 = vld [vmem:[#allocation5 + $0xa0] sm:$0xff]  ;;  %v79_v61 = vld [vmem:[#allocation5 + $0x90] sm:$0xff]  ;;  %s1955_s2 = sshll.u32 %s2595_s0, 4  ;;  %s1956_s2 = int_to_ptr.vmem [resolvable:$true] %s1955_s2 }
  0x16   :  { %1974 = vtanh.f32 %v379_v11  ;;  %v377_v28 = vadd.f32 %v2631_v7, %v63_v21  ;;  %v378_v30 = vadd.f32 %v2633_v8, %v64_v23  ;;  %v385_v33 = vadd.f32 %v2631_v7, %v71_v26  ;;  %v82_v60 = vld [vmem:[#allocation5 + $0xa8] sm:$0xff]  ;;  %v80_v9 = vld [vmem:[#allocation5 + $0x98] sm:$0xff]  ;;  %v83_v14 = vld [vmem:[#allocation5 + $0xb0] sm:$0xff] }
  0x17   :  { %1976 = vtanh.f32 %v380_v12  ;;  %v386_v37 = vadd.f32 %v2633_v8, %v72_v29  ;;  %v389_v41 = vadd.f32 %v2631_v7, %v75_v31  ;;  %v390_v45 = vadd.f32 %v2633_v8, %v76_v34 }
  0x18   :  { %1978 = vtanh.f32 %v375_v13  ;;  %v387_v50 = vadd.f32 %v2631_v7, %v73_v38  ;;  %v388_v54 = vadd.f32 %v2633_v8, %v74_v42  ;;  %v391_v59 = vadd.f32 %v2631_v7, %v77_v46 }
  0x19   :  { %1980 = vtanh.f32 %v376_v15  ;;  %v392_v1 = vadd.f32 %v2633_v8, %v78_v51  ;;  %v395_v6 = vadd.f32 %v2631_v7, %v81_v55  ;;  %v396_v12 = vadd.f32 %v2633_v8, %v82_v60 }
  0x1a   :  { %1982 = vtanh.f32 %v383_v18  ;;  %v393_v13 = vadd.f32 %v2631_v7, %v79_v61  ;;  %v84_v18 = vld [vmem:[#allocation5 + $0xb8] sm:$0xff]  ;;  %v394_v21 = vadd.f32 %v2633_v8, %v80_v9  ;;  %v397_v26 = vadd.f32 %v2631_v7, %v83_v14 }
  0x1b   :  { %1984 = vtanh.f32 %v384_v20  ;;  %v323_v31 = vsel %vm322_vm1, %v2625_v0, %v2627_v2  ;;  %v92_v14 = vld [vmem:[#allocation5 + $0xf8] sm:$0xff]  ;;  %vm1693_vm11 = vcmask 589312   ;;  %vm3536_vm12 = vcmask 1044484  }
  0x1c   :  { %v1975_v32 = vpop.eup %1974  ;;  %1986 = vtanh.f32 %v381_v22  ;;  %vm1697_vm13 = vcmask 654912   ;;  %vm1701_vm14 = vcmask 720512   ;;  %vm1705_vm15 = vcmask 786112  }
  0x1d   :  { %v1977_v35 = vpop.eup %1976  ;;  %v896_v36 = vmul.f32 %v1975_v32, %v2642_v24  ;;  %1988 = vtanh.f32 %v382_v25  ;;  %vm1709_vm0 = vcmask 851712  }
  0x1e   :  { %v1979_v39 = vpop.eup %1978  ;;  %v897_v40 = vmul.f32 %v1977_v35, %v2645_v27  ;;  %1990 = vtanh.f32 %v377_v28  ;;  %v87_v28 = vld [vmem:[#allocation5 + $0xd0] sm:$0xff] }
  0x1f   :  { %v1981_v43 = vpop.eup %1980  ;;  %v892_v44 = vmul.f32 %v1979_v39, %v2642_v24  ;;  %1992 = vtanh.f32 %v378_v30  ;;  %v398_v30 = vadd.f32 %v2633_v8, %v84_v18  ;;  %v401_v38 = vadd.f32 %v2631_v7, %v87_v28  ;;  %v85_v39 = vld [vmem:[#allocation5 + $0xc0] sm:$0xff] }
  0x20   :  { %v1983_v47 = vpop.eup %1982  ;;  %v1154_v48 = vadd.f32 %v897_v40, %v896_v36  ;;  %v893_v49 = vmul.f32 %v1981_v43, %v2645_v27  ;;  %1994 = vtanh.f32 %v385_v33  ;;  %v88_v36 = vld [vmem:[#allocation5 + $0xd8] sm:$0xff]  ;;  %v86_v43 = vld [vmem:[#allocation5 + $0xc8] sm:$0xff] }
  0x21   :  { %v1985_v52 = vpop.eup %1984  ;;  %v900_v53 = vmul.f32 %v1983_v47, %v2642_v24  ;;  %1996 = vtanh.f32 %v386_v37  ;;  %v402_v46 = vadd.f32 %v2633_v8, %v88_v36  ;;  %v89_v47 = vld [vmem:[#allocation5 + $0xe0] sm:$0xff]  ;;  %v400_v55 = vadd.f32 %v2633_v8, %v86_v43  ;;  %v100_v36 = vld [vmem:[#allocation5 + $0x138] sm:$0xff] }
  0x22   :  { %v1987_v56 = vpop.eup %1986  ;;  %1155 = vadd.xlane.f32.xlu1 %v1154_v48  ;;  %v1148_v57 = vadd.f32 %v893_v49, %v892_v44  ;;  %v901_v58 = vmul.f32 %v1985_v52, %v2645_v27  ;;  %1998 = vtanh.f32 %v389_v41  ;;  %v324_v44 = vrot.slane %v323_v31, 1  ;;  %v101_v43 = vld [vmem:[#allocation5 + $0x140] sm:$0xff] }
  0x23   :  { %v1989_v62 = vpop.eup %1988  ;;  %v898_v63 = vmul.f32 %v1987_v56, %v2642_v24  ;;  %2000 = vtanh.f32 %v390_v45  ;;  %v399_v52 = vadd.f32 %v2631_v7, %v85_v39 }
  0x24   :  { %v1991_v3 = vpop.eup %1990  ;;  %1149 = vadd.xlane.f32.xlu0 %v1148_v57  ;;  %v1160_v4 = vadd.f32 %v901_v58, %v900_v53  ;;  %v899_v5 = vmul.f32 %v1989_v62, %v2645_v27  ;;  %2002 = vtanh.f32 %v387_v50  ;;  %v90_v53 = vld [vmem:[#allocation5 + $0xe8] sm:$0xff]  ;;  %v403_v58 = vadd.f32 %v2631_v7, %v89_v47  ;;  %v93_v62 = vld [vmem:[#allocation5 + $0x100] sm:$0xff] }
  0x25   :  { %v1993_v10 = vpop.eup %1992  ;;  %v894_v11 = vmul.f32 %v1991_v3, %v2642_v24  ;;  %2004 = vtanh.f32 %v388_v54  ;;  %v404_v61 = vadd.f32 %v2633_v8, %v90_v53 }
  0x26   :  { %v1995_v15 = vpop.eup %1994  ;;  %1161 = vadd.xlane.f32.xlu2 %v1160_v4  ;;  %v1157_v16 = vadd.f32 %v899_v5, %v898_v63  ;;  %v895_v17 = vmul.f32 %v1993_v10, %v2645_v27  ;;  %2006 = vtanh.f32 %v391_v59  ;;  %v2689_v59 = vperm.slane %v324_v44, 0  ;;  %v91_v10 = vld [vmem:[#allocation5 + $0xf0] sm:$0xff] }
  0x27   :  { %v1997_v19 = vpop.eup %1996  ;;  %v902_v20 = vmul.f32 %v1995_v15, %v2642_v24  ;;  %2008 = vtanh.f32 %v392_v1  ;;  %v2692_v63 = vperm.slane %v324_v44, 1 }
  0x28   :  { %v1999_v22 = vpop.eup %1998  ;;  %v1151_v23 = vadd.f32 %v895_v17, %v894_v11  ;;  %v903_v25 = vmul.f32 %v1997_v19, %v2645_v27  ;;  %2010 = vtanh.f32 %v395_v6  ;;  %v94_v6 = vld [vmem:[#allocation5 + $0x108] sm:$0xff] }
  0x29   :  { %v2001_v29 = vpop.eup %2000  ;;  %2012 = vtanh.f32 %v396_v12  ;;  %v906_v34 = vmul.f32 %v1999_v22, %v2642_v24  ;;  %v408_v15 = vadd.f32 %v2692_v63, %v94_v6  ;;  %v96_v22 = vld [vmem:[#allocation5 + $0x118] sm:$0xff] }
  0x2a   :  { %v2003_v32 = vpop.eup %2002  ;;  %1158 = vadd.xlane.f32.xlu1 %v1157_v16  ;;  %v1163_v33 = vadd.f32 %v903_v25, %v902_v20  ;;  %v907_v35 = vmul.f32 %v2001_v29, %v2645_v27  ;;  %2014 = vtanh.f32 %v393_v13  ;;  %v407_v13 = vadd.f32 %v2689_v59, %v93_v62  ;;  %v95_v16 = vld [vmem:[#allocation5 + $0x110] sm:$0xff] }
  0x2b   :  { %v2005_v37 = vpop.eup %2004  ;;  %2016 = vtanh.f32 %v394_v21  ;;  %v904_v41 = vmul.f32 %v2003_v32, %v2642_v24  ;;  %v405_v21 = vadd.f32 %v2631_v7, %v91_v10  ;;  %v406_v25 = vadd.f32 %v2633_v8, %v92_v14  ;;  %v99_v32 = vld [vmem:[#allocation5 + $0x130] sm:$0xff]  ;;  %v104_v10 = vld [vmem:[#allocation5 + $0x158] sm:$0xff] }
  0x2c   :  { %v2007_v40 = vpop.eup %2006  ;;  %1152 = vadd.xlane.f32.xlu0 %v1151_v23  ;;  %v905_v42 = vmul.f32 %v2005_v37, %v2645_v27  ;;  %2018 = vtanh.f32 %v397_v26  ;;  %v1169_v49 = vadd.f32 %v907_v35, %v906_v34  ;;  %v409_v29 = vadd.f32 %v2689_v59, %v95_v16  ;;  %v97_v37 = vld [vmem:[#allocation5 + $0x120] sm:$0xff] }
  0x2d   :  { %v2009_v45 = vpop.eup %2008  ;;  %2020 = vtanh.f32 %v398_v30  ;;  %v908_v50 = vmul.f32 %v2007_v40, %v2642_v24  ;;  %v410_v31 = vadd.f32 %v2692_v63, %v96_v22  ;;  %v413_v40 = vadd.f32 %v2689_v59, %v99_v32 }
  0x2e   :  { %v2011_v48 = vpop.eup %2010  ;;  %1164 = vadd.xlane.f32.xlu2 %v1163_v33  ;;  %v909_v51 = vmul.f32 %v2009_v45, %v2645_v27  ;;  %v1166_v57 = vadd.f32 %v905_v42, %v904_v41  ;;  %2022 = vtanh.f32 %v401_v38  ;;  %v98_v41 = vld [vmem:[#allocation5 + $0x128] sm:$0xff]  ;;  %v414_v42 = vadd.f32 %v2692_v63, %v100_v36 }
  0x2f   :  { %v2013_v54 = vpop.eup %2012  ;;  %2024 = vtanh.f32 %v402_v46  ;;  %v912_v4 = vmul.f32 %v2011_v48, %v2642_v24  ;;  %v411_v48 = vadd.f32 %v2689_v59, %v97_v37  ;;  %v110_v37 = vld [vmem:[#allocation5 + $0x188] sm:$0xff] }
  0x30   :  { %v2015_v56 = vpop.eup %2014  ;;  %v1172_v3 = vadd.f32 %v909_v51, %v908_v50  ;;  %v913_v5 = vmul.f32 %v2013_v54, %v2645_v27  ;;  %2026 = vtanh.f32 %v399_v52  ;;  %v412_v51 = vadd.f32 %v2692_v63, %v98_v41 }
  0x31   :  { %v2017_v60 = vpop.eup %2016  ;;  %2028 = vtanh.f32 %v400_v55  ;;  %v910_v11 = vmul.f32 %v2015_v56, %v2642_v24  ;;  %v415_v54 = vadd.f32 %v2689_v59, %v101_v43 }
  0x32   :  { %v2019_v1 = vpop.eup %2018  ;;  %1170 = vadd.xlane.f32.xlu1 %v1169_v49  ;;  %v911_v12 = vmul.f32 %v2017_v60, %v2645_v27  ;;  %2030 = vtanh.f32 %v403_v58  ;;  %v1178_v18 = vadd.f32 %v913_v5, %v912_v4  ;;  %v102_v49 = vld [vmem:[#allocation5 + $0x148] sm:$0xff]  ;;  %v103_v4 = vld [vmem:[#allocation5 + $0x150] sm:$0xff] }
  0x33   :  { %v2021_v9 = vpop.eup %2020  ;;  %2032 = vtanh.f32 %v404_v61  ;;  %v914_v19 = vmul.f32 %v2019_v1, %v2642_v24  ;;  %v416_v56 = vadd.f32 %v2692_v63, %v102_v49  ;;  %v106_v1 = vld [vmem:[#allocation5 + $0x168] sm:$0xff] }
  0x34   :  { %1167 = vadd.xlane.f32.xlu0 %v1166_v57  ;;  %v2023_v17 = vpop.eup %2022  ;;  %v915_v20 = vmul.f32 %v2021_v9, %v2645_v27  ;;  %v1175_v28 = vadd.f32 %v911_v12, %v910_v11  ;;  %2034 = vtanh.f32 %v407_v13  ;;  %v105_v57 = vld [vmem:[#allocation5 + $0x160] sm:$0xff]  ;;  %v420_v11 = vadd.f32 %v2692_v63, %v106_v1  ;;  %v107_v12 = vld [vmem:[#allocation5 + $0x170] sm:$0xff] }
  0x35   :  { %v2025_v23 = vpop.eup %2024  ;;  %2036 = vtanh.f32 %v408_v15  ;;  %v918_v35 = vmul.f32 %v2023_v17, %v2642_v24  ;;  %v419_v9 = vadd.f32 %v2689_v59, %v105_v57  ;;  %v417_v17 = vadd.f32 %v2689_v59, %v103_v4  ;;  %v116_v4 = vld [vmem:[#allocation5 + $0x1b8] sm:$0xff] }
  0x36   :  { %1173 = vadd.xlane.f32.xlu2 %v1172_v3  ;;  %v2027_v26 = vpop.eup %2026  ;;  %v1181_v34 = vadd.f32 %v915_v20, %v914_v19  ;;  %v919_v7 = vmul.f32 %v2025_v23, %v2645_v27  ;;  %2038 = vtanh.f32 %v405_v21  ;;  %v418_v20 = vadd.f32 %v2692_v63, %v104_v10 }
  0x37   :  { %v2029_v30 = vpop.eup %2028  ;;  %2040 = vtanh.f32 %v406_v25  ;;  %v916_v38 = vmul.f32 %v2027_v26, %v2642_v24  ;;  %v421_v23 = vadd.f32 %v2689_v59, %v107_v12 }
  0x38   :  { %v2031_v33 = vpop.eup %2030  ;;  %v917_v39 = vmul.f32 %v2029_v30, %v2645_v27  ;;  %2042 = vtanh.f32 %v409_v29  ;;  %v1187_v45 = vadd.f32 %v919_v7, %v918_v35  ;;  %v109_v35 = vld [vmem:[#allocation5 + $0x180] sm:$0xff] }
  0x39   :  { %v2033_v8 = vpop.eup %2032  ;;  %2044 = vtanh.f32 %v410_v31  ;;  %v920_v46 = vmul.f32 %v2031_v33, %v2642_v24  ;;  %v112_v33 = vld [vmem:[#allocation5 + $0x198] sm:$0xff] }
  0x3a   :  { %1179 = vadd.xlane.f32.xlu1 %v1178_v18  ;;  %v2035_v44 = vpop.eup %2034  ;;  %v921_v47 = vmul.f32 %v2033_v8, %v2645_v27  ;;  %v1184_v53 = vadd.f32 %v917_v39, %v916_v38  ;;  %2046 = vtanh.f32 %v413_v40  ;;  %v108_v18 = vld [vmem:[#allocation5 + $0x178] sm:$0xff]  ;;  %v426_v38 = vadd.f32 %v2692_v63, %v112_v33  ;;  %v113_v39 = vld [vmem:[#allocation5 + $0x1a0] sm:$0xff] }
  0x3b   :  { %v2037_v50 = vpop.eup %2036  ;;  %2048 = vtanh.f32 %v414_v42  ;;  %v924_v61 = vmul.f32 %v2035_v44, %v2642_v24  ;;  %v422_v26 = vadd.f32 %v2692_v63, %v108_v18  ;;  %v423_v44 = vadd.f32 %v2689_v59, %v109_v35  ;;  %v121_v33 = vld [vmem:[#allocation5 + $0x1e0] sm:$0xff] }
  0x3c   :  { %1176 = vadd.xlane.f32.xlu0 %v1175_v28  ;;  %v2039_v52 = vpop.eup %2038  ;;  %v1190_v60 = vadd.f32 %v921_v47, %v920_v46  ;;  %v925_v62 = vmul.f32 %v2037_v50, %v2645_v27  ;;  %2050 = vtanh.f32 %v411_v48  ;;  %v111_v28 = vld [vmem:[#allocation5 + $0x190] sm:$0xff]  ;;  %v424_v47 = vadd.f32 %v2692_v63, %v110_v37  ;;  %v125_v37 = vld [vmem:[#allocation5 + $0x200] sm:$0xff] }
  0x3d   :  { %v2041_v55 = vpop.eup %2040  ;;  %2052 = vtanh.f32 %v412_v51  ;;  %v922_v5 = vmul.f32 %v2039_v52, %v2642_v24  ;;  %v425_v8 = vadd.f32 %v2689_v59, %v111_v28  ;;  %v427_v50 = vadd.f32 %v2689_v59, %v113_v39 }
  0x3e   :  { %1182 = vadd.xlane.f32.xlu2 %v1181_v34  ;;  %v2043_v58 = vpop.eup %2042  ;;  %v923_v6 = vmul.f32 %v2041_v55, %v2645_v27  ;;  %2054 = vtanh.f32 %v415_v54  ;;  %v1196_v14 = vadd.f32 %v925_v62, %v924_v61  ;;  %v115_v61 = vld [vmem:[#allocation5 + $0x1b0] sm:$0xff] }
  0x3f   :  { %v2045_v3 = vpop.eup %2044  ;;  %2056 = vtanh.f32 %v416_v56  ;;  %v926_v15 = vmul.f32 %v2043_v58, %v2642_v24  ;;  %v118_v58 = vld [vmem:[#allocation5 + $0x1c8] sm:$0xff] }
  0x40   :  { %v2047_v13 = vpop.eup %2046  ;;  %v927_v16 = vmul.f32 %v2045_v3, %v2645_v27  ;;  %v1193_v22 = vadd.f32 %v923_v6, %v922_v5  ;;  %2058 = vtanh.f32 %v419_v9  ;;  %v432_v5 = vadd.f32 %v2692_v63, %v118_v58  ;;  %v119_v6 = vld [vmem:[#allocation5 + $0x1d0] sm:$0xff] }
  0x41   :  { %v2049_v19 = vpop.eup %2048  ;;  %2060 = vtanh.f32 %v420_v11  ;;  %v930_v31 = vmul.f32 %v2047_v13, %v2642_v24  ;;  %v326_v9 = vsel %vm3538_vm2, %v2625_v0, %v2627_v2  ;;  %vm1721_vm2 = vcmask 1048512  }
  0x42   :  { %1188 = vadd.xlane.f32.xlu1 %v1187_v45  ;;  %v2051_v21 = vpop.eup %2050  ;;  %v1199_v30 = vadd.f32 %v927_v16, %v926_v15  ;;  %v931_v32 = vmul.f32 %v2049_v19, %v2645_v27  ;;  %2062 = vtanh.f32 %v417_v17  ;;  %v114_v45 = vld [vmem:[#allocation5 + $0x1a8] sm:$0xff]  ;;  %v120_v15 = vld [vmem:[#allocation5 + $0x1d8] sm:$0xff]  ;;  %v430_v17 = vadd.f32 %v2692_v63, %v116_v4 }
  0x43   :  { %v2053_v25 = vpop.eup %2052  ;;  %2064 = vtanh.f32 %v418_v20  ;;  %v928_v7 = vmul.f32 %v2051_v21, %v2642_v24  ;;  %v428_v52 = vadd.f32 %v2692_v63, %v114_v45  ;;  %v433_v20 = vadd.f32 %v2689_v59, %v119_v6  ;;  %v123_v21 = vld [vmem:[#allocation5 + $0x1f0] sm:$0xff] }
  0x44   :  { %1185 = vadd.xlane.f32.xlu0 %v1184_v53  ;;  %v2055_v29 = vpop.eup %2054  ;;  %v929_v36 = vmul.f32 %v2053_v25, %v2645_v27  ;;  %2066 = vtanh.f32 %v421_v23  ;;  %v1205_v41 = vadd.f32 %v931_v32, %v930_v31  ;;  %v117_v53 = vld [vmem:[#allocation5 + $0x1c0] sm:$0xff]  ;;  %v327_v0 = vrot.slane %v326_v9, 2 }
  0x45   :  { %v2057_v34 = vpop.eup %2056  ;;  %2068 = vtanh.f32 %v422_v26  ;;  %v932_v42 = vmul.f32 %v2055_v29, %v2642_v24  ;;  %v431_v3 = vadd.f32 %v2689_v59, %v117_v53  ;;  %v434_v23 = vadd.f32 %v2692_v63, %v120_v15 }
  0x46   :  { %1191 = vadd.xlane.f32.xlu2 %v1190_v60  ;;  %v2059_v40 = vpop.eup %2058  ;;  %v933_v43 = vmul.f32 %v2057_v34, %v2645_v27  ;;  %v1202_v49 = vadd.f32 %v929_v36, %v928_v7  ;;  %2070 = vtanh.f32 %v425_v8  ;;  %v437_v32 = vadd.f32 %v2689_v59, %v123_v21  ;;  %v122_v7 = vld [vmem:[#allocation5 + $0x1e8] sm:$0xff] }
  0x47   :  { %v2061_v46 = vpop.eup %2060  ;;  %2072 = vtanh.f32 %v426_v38  ;;  %v936_v56 = vmul.f32 %v2059_v40, %v2642_v24  ;;  %v2762_v36 = vperm.slane %v327_v0, 0  ;;  %v2765_v38 = vperm.slane %v327_v0, 1 }
  0x48   :  { %v2063_v48 = vpop.eup %2062  ;;  %v1208_v55 = vadd.f32 %v933_v43, %v932_v42  ;;  %v937_v57 = vmul.f32 %v2061_v46, %v2645_v27  ;;  %2074 = vtanh.f32 %v423_v44  ;;  %v435_v43 = vadd.f32 %v2689_v59, %v121_v33  ;;  %v126_v44 = vld [vmem:[#allocation5 + $0x208] sm:$0xff]  ;;  %v137_v33 = vld [vmem:[#allocation5 + $0x260] sm:$0xff] }
  0x49   :  { %v2065_v51 = vpop.eup %2064  ;;  %2076 = vtanh.f32 %v424_v47  ;;  %v934_v62 = vmul.f32 %v2063_v48, %v2642_v24  ;;  %v436_v46 = vadd.f32 %v2692_v63, %v122_v7 }
  0x4a   :  { %1197 = vadd.xlane.f32.xlu1 %v1196_v14  ;;  %v2067_v54 = vpop.eup %2066  ;;  %v935_v1 = vmul.f32 %v2065_v51, %v2645_v27  ;;  %2078 = vtanh.f32 %v427_v50  ;;  %v1214_v11 = vadd.f32 %v937_v57, %v936_v56  ;;  %v429_v14 = vadd.f32 %v2689_v59, %v115_v61  ;;  %v130_v56 = vld [vmem:[#allocation5 + $0x228] sm:$0xff]  ;;  %v127_v57 = vld [vmem:[#allocation5 + $0x210] sm:$0xff] }
  0x4b   :  { %v2069_v60 = vpop.eup %2068  ;;  %2080 = vtanh.f32 %v428_v52  ;;  %v938_v12 = vmul.f32 %v2067_v54, %v2642_v24  ;;  %v440_v51 = vadd.f32 %v2765_v38, %v126_v44  ;;  %v129_v52 = vld [vmem:[#allocation5 + $0x220] sm:$0xff]  ;;  %v451_v44 = vadd.f32 %v2762_v36, %v137_v33 }
  0x4c   :  { %1194 = vadd.xlane.f32.xlu0 %v1193_v22  ;;  %v2071_v10 = vpop.eup %2070  ;;  %v939_v13 = vmul.f32 %v2069_v60, %v2645_v27  ;;  %v1211_v19 = vadd.f32 %v935_v1, %v934_v62  ;;  %2082 = vtanh.f32 %v431_v3  ;;  %v443_v61 = vadd.f32 %v2762_v36, %v129_v52  ;;  %v128_v62 = vld [vmem:[#allocation5 + $0x218] sm:$0xff]  ;;  %v131_v3 = vld [vmem:[#allocation5 + $0x230] sm:$0xff] }
  0x4d   :  { %v2073_v16 = vpop.eup %2072  ;;  %2084 = vtanh.f32 %v432_v5  ;;  %v942_v28 = vmul.f32 %v2071_v10, %v2642_v24  ;;  %v444_v1 = vadd.f32 %v2765_v38, %v130_v56  ;;  %v441_v10 = vadd.f32 %v2762_v36, %v127_v57  ;;  %v140_v57 = vld [vmem:[#allocation5 + $0x278] sm:$0xff] }
  0x4e   :  { %1200 = vadd.xlane.f32.xlu2 %v1199_v30  ;;  %v2075_v18 = vpop.eup %2074  ;;  %v1217_v26 = vadd.f32 %v939_v13, %v938_v12  ;;  %v943_v29 = vmul.f32 %v2073_v16, %v2645_v27  ;;  %2086 = vtanh.f32 %v429_v14  ;;  %v124_v30 = vld [vmem:[#allocation5 + $0x1f8] sm:$0xff]  ;;  %v442_v13 = vadd.f32 %v2765_v38, %v128_v62 }
  0x4f   :  { %v2077_v22 = vpop.eup %2076  ;;  %2088 = vtanh.f32 %v430_v17  ;;  %v940_v34 = vmul.f32 %v2075_v18, %v2642_v24  ;;  %v438_v8 = vadd.f32 %v2692_v63, %v124_v30  ;;  %v445_v16 = vadd.f32 %v2762_v36, %v131_v3  ;;  %v135_v17 = vld [vmem:[#allocation5 + $0x250] sm:$0xff] }
  0x50   :  { %v2079_v25 = vpop.eup %2078  ;;  %v941_v35 = vmul.f32 %v2077_v22, %v2645_v27  ;;  %2090 = vtanh.f32 %v433_v20  ;;  %v1223_v40 = vadd.f32 %v943_v29, %v942_v28  ;;  %v136_v20 = vld [vmem:[#allocation5 + $0x258] sm:$0xff]  ;;  %v133_v28 = vld [vmem:[#allocation5 + $0x240] sm:$0xff] }
  0x51   :  { %v2081_v31 = vpop.eup %2080  ;;  %2092 = vtanh.f32 %v434_v23 }
  0x52   :  { %1206 = vadd.xlane.f32.xlu1 %v1205_v41  ;;  %v2083_v39 = vpop.eup %2082  ;;  %v944_v41 = vmul.f32 %v2079_v25, %v2642_v24  ;;  %v945_v42 = vmul.f32 %v2081_v31, %v2645_v27  ;;  %v1220_v48 = vadd.f32 %v941_v35, %v940_v34  ;;  %2094 = vtanh.f32 %v437_v32  ;;  %v134_v32 = vld [vmem:[#allocation5 + $0x248] sm:$0xff] }
  0x53   :  { %v2085_v45 = vpop.eup %2084  ;;  %2096 = vtanh.f32 %v438_v8  ;;  %v450_v31 = vadd.f32 %v2765_v38, %v136_v20  ;;  %v145_v20 = vld [vmem:[#allocation5 + $0x2a0] sm:$0xff] }
  0x54   :  { %1203 = vadd.xlane.f32.xlu0 %v1202_v49  ;;  %v2087_v47 = vpop.eup %2086  ;;  %v439_v49 = vadd.f32 %v2762_v36, %v125_v37  ;;  %v1226_v54 = vadd.f32 %v945_v42, %v944_v41  ;;  %v949_v59 = vmul.f32 %v2085_v45, %v2645_v27  ;;  %2098 = vtanh.f32 %v435_v43  ;;  %v141_v45 = vld [vmem:[#allocation5 + $0x280] sm:$0xff] }
  0x55   :  { %v2089_v50 = vpop.eup %2088  ;;  %2100 = vtanh.f32 %v436_v46  ;;  %v946_v58 = vmul.f32 %v2087_v47, %v2642_v24  ;;  %v447_v37 = vadd.f32 %v2762_v36, %v133_v28  ;;  %v448_v41 = vadd.f32 %v2765_v38, %v134_v32  ;;  %v149_v28 = vld [vmem:[#allocation5 + $0x2c0] sm:$0xff]  ;;  %v150_v32 = vld [vmem:[#allocation5 + $0x2c8] sm:$0xff] }
  0x56   :  { %1209 = vadd.xlane.f32.xlu2 %v1208_v55  ;;  %v2091_v53 = vpop.eup %2090  ;;  %v948_v55 = vmul.f32 %v2083_v39, %v2642_v24  ;;  %v947_v60 = vmul.f32 %v2089_v50, %v2645_v27  ;;  %2102 = vtanh.f32 %v439_v49  ;;  %v138_v39 = vld [vmem:[#allocation5 + $0x268] sm:$0xff] }
  0x57   :  { %v2093_v63 = vpop.eup %2092  ;;  %2104 = vtanh.f32 %v440_v51  ;;  %v950_v6 = vmul.f32 %v2091_v53, %v2642_v24  ;;  %v452_v47 = vadd.f32 %v2765_v38, %v138_v39  ;;  %v463_v39 = vadd.f32 %v2762_v36, %v149_v28 }
  0x58   :  { %v2095_v4 = vpop.eup %2094  ;;  %v1232_v5 = vadd.f32 %v949_v59, %v948_v55  ;;  %v951_v9 = vmul.f32 %v2093_v63, %v2645_v27  ;;  %v1229_v15 = vadd.f32 %v947_v60, %v946_v58  ;;  %2106 = vtanh.f32 %v443_v61  ;;  %v139_v55 = vld [vmem:[#allocation5 + $0x270] sm:$0xff] }
  0x59   :  { %v2097_v12 = vpop.eup %2096  ;;  %2108 = vtanh.f32 %v444_v1  ;;  %v954_v22 = vmul.f32 %v2095_v4, %v2642_v24  ;;  %v143_v60 = vld [vmem:[#allocation5 + $0x290] sm:$0xff]  ;;  %v453_v4 = vadd.f32 %v2762_v36, %v139_v55 }
  0x5a   :  { %1215 = vadd.xlane.f32.xlu1 %v1214_v11  ;;  %v132_v11 = vld [vmem:[#allocation5 + $0x238] sm:$0xff]  ;;  %v2099_v14 = vpop.eup %2098  ;;  %v1235_v0 = vadd.f32 %v951_v9, %v950_v6  ;;  %v955_v23 = vmul.f32 %v2097_v12, %v2645_v27  ;;  %2110 = vtanh.f32 %v441_v10  ;;  %v454_v6 = vadd.f32 %v2765_v38, %v140_v57  ;;  %v147_v12 = vld [vmem:[#allocation5 + $0x2b0] sm:$0xff] }
  0x5b   :  { %v2101_v18 = vpop.eup %2100  ;;  %2112 = vtanh.f32 %v442_v13  ;;  %v952_v29 = vmul.f32 %v2099_v14, %v2642_v24  ;;  %v155_v57 = vld [vmem:[#allocation5 + $0x2f0] sm:$0xff] }
  0x5c   :  { %1212 = vadd.xlane.f32.xlu0 %v1211_v19  ;;  %v446_v19 = vadd.f32 %v2765_v38, %v132_v11  ;;  %v2103_v21 = vpop.eup %2102  ;;  %v953_v30 = vmul.f32 %v2101_v18, %v2645_v27  ;;  %2114 = vtanh.f32 %v445_v16  ;;  %v1241_v35 = vadd.f32 %v955_v23, %v954_v22  ;;  %v146_v22 = vld [vmem:[#allocation5 + $0x2a8] sm:$0xff] }
  0x5d   :  { %v2105_v25 = vpop.eup %2104  ;;  %v956_v7 = vmul.f32 %v2103_v21, %v2642_v24  ;;  %v457_v11 = vadd.f32 %v2762_v36, %v143_v60 }
  0x5e   :  { %1218 = vadd.xlane.f32.xlu2 %v1217_v26  ;;  %v449_v26 = vadd.f32 %v2762_v36, %v135_v17  ;;  %2116 = vtanh.f32 %v446_v19  ;;  %v2107_v34 = vpop.eup %2106  ;;  %v957_v8 = vmul.f32 %v2105_v25, %v2645_v27  ;;  %v1238_v43 = vadd.f32 %v953_v30, %v952_v29  ;;  %v148_v17 = vld [vmem:[#allocation5 + $0x2b8] sm:$0xff] }
  0x5f   :  { %v960_v51 = vmul.f32 %v2107_v34, %v2642_v24 }
  0x60   :  { %2118 = vtanh.f32 %v449_v26  ;;  %v1244_v50 = vadd.f32 %v957_v8, %v956_v7  ;;  %v462_v26 = vadd.f32 %v2765_v38, %v148_v17  ;;  %v460_v7 = vadd.f32 %v2765_v38, %v146_v22  ;;  %v2819_v8 = vld [vmem:[#allocation2] sm:$0xff] }
  0x61   :  { %2120 = vtanh.f32 %v450_v31  ;;  %v459_v31 = vadd.f32 %v2762_v36, %v145_v20 }
  0x62   :  { %1224 = vadd.xlane.f32.xlu1 %v1223_v40  ;;  %v2109_v40 = vpop.eup %2108  ;;  %2122 = vtanh.f32 %v447_v37  ;;  %v329_v37 = vsel %vm3537_vm3, %v2819_v8, %v2627_v2  ;;  %vm1717_vm3 = vcmask 982912  }
  0x63   :  { %v2111_v42 = vpop.eup %2110  ;;  %v961_v52 = vmul.f32 %v2109_v40, %v2645_v27  ;;  %2124 = vtanh.f32 %v448_v41  ;;  %v153_v40 = vld [vmem:[#allocation5 + $0x2e0] sm:$0xff] }
  0x64   :  { %1221 = vadd.xlane.f32.xlu0 %v1220_v48  ;;  %v2113_v46 = vpop.eup %2112  ;;  %v142_v48 = vld [vmem:[#allocation5 + $0x288] sm:$0xff]  ;;  %v958_v59 = vmul.f32 %v2111_v42, %v2642_v24  ;;  %2126 = vtanh.f32 %v451_v44 }
  0x65   :  { %v2115_v49 = vpop.eup %2114  ;;  %v959_v56 = vmul.f32 %v2113_v46, %v2645_v27  ;;  %v456_v63 = vadd.f32 %v2765_v38, %v142_v48  ;;  %2128 = vtanh.f32 %v452_v47  ;;  %v1250_v62 = vadd.f32 %v961_v52, %v960_v51  ;;  %v154_v44 = vld [vmem:[#allocation5 + $0x2e8] sm:$0xff]  ;;  %v151_v48 = vld [vmem:[#allocation5 + $0x2d0] sm:$0xff] }
  0x66   :  { %1227 = vadd.xlane.f32.xlu2 %v1226_v54  ;;  %v2117_v53 = vpop.eup %2116  ;;  %v455_v54 = vadd.f32 %v2762_v36, %v141_v45  ;;  %v962_v1 = vmul.f32 %v2115_v49, %v2642_v24  ;;  %v330_v49 = vrot.slane %v329_v37, 3  ;;  %v467_v52 = vadd.f32 %v2762_v36, %v153_v40  ;;  %v166_v37 = vld [vmem:[#allocation5 + $0x348] sm:$0xff] }
  0x67   :  { %v2119_v58 = vpop.eup %2118  ;;  %v963_v3 = vmul.f32 %v2117_v53, %v2645_v27  ;;  %v1247_v10 = vadd.f32 %v959_v56, %v958_v59  ;;  %v152_v53 = vld [vmem:[#allocation5 + $0x2d8] sm:$0xff]  ;;  %v468_v55 = vadd.f32 %v2765_v38, %v154_v44 }
  0x68   :  { %v2121_v61 = vpop.eup %2120  ;;  %2130 = vtanh.f32 %v455_v54  ;;  %v966_v14 = vmul.f32 %v2119_v58, %v2642_v24 }
  0x69   :  { %v2123_v9 = vpop.eup %2122  ;;  %2132 = vtanh.f32 %v456_v63  ;;  %v1253_v19 = vadd.f32 %v963_v3, %v962_v1  ;;  %v465_v63 = vadd.f32 %v2762_v36, %v151_v48  ;;  %v2834_v1 = vperm.slane %v330_v49, 0 }
  0x6a   :  { %1233 = vadd.xlane.f32.xlu1 %v1232_v5  ;;  %v144_v5 = vld [vmem:[#allocation5 + $0x298] sm:$0xff]  ;;  %v2125_v13 = vpop.eup %2124  ;;  %2134 = vtanh.f32 %v453_v4  ;;  %v964_v23 = vmul.f32 %v2123_v9, %v2642_v24  ;;  %v2838_v9 = vperm.slane %v330_v49, 1 }
  0x6b   :  { %v458_v16 = vadd.f32 %v2765_v38, %v144_v5  ;;  %v2127_v18 = vpop.eup %2126  ;;  %2136 = vtanh.f32 %v454_v6  ;;  %v965_v25 = vmul.f32 %v2125_v13, %v2645_v27  ;;  %v159_v6 = vld [vmem:[#allocation5 + $0x310] sm:$0xff] }
  0x6c   :  { %1230 = vadd.xlane.f32.xlu0 %v1229_v15  ;;  %v967_v15 = vmul.f32 %v2121_v61, %v2645_v27  ;;  %v2129_v21 = vpop.eup %2128  ;;  %2138 = vtanh.f32 %v457_v11  ;;  %v968_v34 = vmul.f32 %v2127_v18, %v2642_v24  ;;  %v466_v61 = vadd.f32 %v2765_v38, %v152_v53 }
  0x6d   :  { %2140 = vtanh.f32 %v458_v16  ;;  %v1256_v42 = vadd.f32 %v965_v25, %v964_v23  ;;  %v469_v11 = vadd.f32 %v2762_v36, %v155_v57  ;;  %v157_v16 = vld [vmem:[#allocation5 + $0x300] sm:$0xff]  ;;  %v473_v18 = vadd.f32 %v2834_v1, %v159_v6 }
  0x6e   :  { %1236 = vadd.xlane.f32.xlu2 %v1235_v0  ;;  %v461_v0 = vadd.f32 %v2762_v36, %v147_v12  ;;  %v2131_v29 = vpop.eup %2130  ;;  %v1259_v30 = vadd.f32 %v967_v15, %v966_v14  ;;  %v160_v12 = vld [vmem:[#allocation5 + $0x318] sm:$0xff]  ;;  %v161_v23 = vld [vmem:[#allocation5 + $0x320] sm:$0xff] }
  0x6f   :  { %v2133_v33 = vpop.eup %2132  ;;  %v972_v46 = vmul.f32 %v2131_v29, %v2642_v24  ;;  %v474_v36 = vadd.f32 %v2838_v9, %v160_v12 }
  0x70   :  { %2142 = vtanh.f32 %v461_v0  ;;  %v2135_v41 = vpop.eup %2134  ;;  %v973_v47 = vmul.f32 %v2133_v33, %v2645_v27 }
  0x71   :  { %2144 = vtanh.f32 %v462_v26  ;;  %v2137_v45 = vpop.eup %2136  ;;  %v970_v59 = vmul.f32 %v2135_v41, %v2642_v24  ;;  %v162_v26 = vld [vmem:[#allocation5 + $0x328] sm:$0xff] }
  0x72   :  { %1242 = vadd.xlane.f32.xlu1 %v1241_v35  ;;  %v969_v35 = vmul.f32 %v2129_v21, %v2645_v27  ;;  %2146 = vtanh.f32 %v459_v31  ;;  %v971_v56 = vmul.f32 %v2137_v45, %v2645_v27  ;;  %v1268_v60 = vadd.f32 %v973_v47, %v972_v46  ;;  %v163_v46 = vld [vmem:[#allocation5 + $0x330] sm:$0xff] }
  0x73   :  { %2148 = vtanh.f32 %v460_v7  ;;  %v475_v7 = vadd.f32 %v2834_v1, %v161_v23  ;;  %v476_v41 = vadd.f32 %v2838_v9, %v162_v26  ;;  %v480_v45 = vadd.f32 %v2838_v9, %v166_v37 }
  0x74   :  { %1239 = vadd.xlane.f32.xlu0 %v1238_v43  ;;  %v464_v43 = vadd.f32 %v2765_v38, %v150_v32  ;;  %v1262_v51 = vadd.f32 %v969_v35, %v968_v34  ;;  %2150 = vtanh.f32 %v463_v39  ;;  %v1265_v14 = vadd.f32 %v971_v56, %v970_v59  ;;  %v165_v32 = vld [vmem:[#allocation5 + $0x340] sm:$0xff]  ;;  %v167_v59 = vld [vmem:[#allocation5 + $0x350] sm:$0xff] }
  0x76   :  { %1245 = vadd.xlane.f32.xlu2 %v1244_v50  ;;  %v2139_v50 = vpop.eup %2138  ;;  %2152 = vtanh.f32 %v464_v43  ;;  %v479_v43 = vadd.f32 %v2834_v1, %v165_v32 }
  0x77   :  { %v2141_v54 = vpop.eup %2140  ;;  %v974_v4 = vmul.f32 %v2139_v50, %v2642_v24  ;;  %2154 = vtanh.f32 %v467_v52 }
  0x78   :  { %v2143_v58 = vpop.eup %2142  ;;  %v975_v5 = vmul.f32 %v2141_v54, %v2645_v27  ;;  %2156 = vtanh.f32 %v468_v55 }
  0x79   :  { %v2145_v3 = vpop.eup %2144  ;;  %2158 = vtanh.f32 %v465_v63  ;;  %v978_v0 = vmul.f32 %v2143_v58, %v2642_v24  ;;  %v477_v63 = vadd.f32 %v2834_v1, %v163_v46 }
  0x7a   :  { %1251 = vadd.xlane.f32.xlu1 %v1250_v62  ;;  %v156_v62 = vld [vmem:[#allocation5 + $0x2f8] sm:$0xff]  ;;  %2160 = vtanh.f32 %v466_v61  ;;  %v1271_v21 = vadd.f32 %v975_v5, %v974_v4  ;;  %v979_v22 = vmul.f32 %v2145_v3, %v2645_v27  ;;  %v481_v5 = vadd.f32 %v2834_v1, %v167_v59 }
  0x7b   :  { %v470_v15 = vadd.f32 %v2765_v38, %v156_v62  ;;  %2162 = vtanh.f32 %v469_v11  ;;  %v471_v38 = vadd.f32 %v2834_v1, %v157_v16  ;;  %v168_v4 = vld [vmem:[#allocation5 + $0x358] sm:$0xff] }
  0x7c   :  { %1248 = vadd.xlane.f32.xlu0 %v1247_v10  ;;  %v2147_v10 = vpop.eup %2146  ;;  %v1277_v40 = vadd.f32 %v979_v22, %v978_v0  ;;  %v482_v22 = vadd.f32 %v2838_v9, %v168_v4 }
  0x7d   :  { %v2149_v13 = vpop.eup %2148  ;;  %v976_v25 = vmul.f32 %v2147_v10, %v2642_v24  ;;  %2164 = vtanh.f32 %v470_v15 }
  0x7e   :  { %1254 = vadd.xlane.f32.xlu2 %v1253_v19  ;;  %v2151_v17 = vpop.eup %2150  ;;  %v158_v19 = vld [vmem:[#allocation5 + $0x308] sm:$0xff]  ;;  %v977_v29 = vmul.f32 %v2149_v13, %v2645_v27  ;;  %2166 = vtanh.f32 %v473_v18 }
  0x7f   :  { %v2153_v20 = vpop.eup %2152  ;;  %v472_v31 = vadd.f32 %v2838_v9, %v158_v19  ;;  %v980_v34 = vmul.f32 %v2151_v17, %v2642_v24  ;;  %2168 = vtanh.f32 %v474_v36  ;;  %v172_v19 = vld [vmem:[#allocation5 + $0x378] sm:$0xff]  ;;  %v169_v36 = vld [vmem:[#allocation5 + $0x360] sm:$0xff] }
  0x80   :  { %v2155_v28 = vpop.eup %2154  ;;  %v981_v35 = vmul.f32 %v2153_v20, %v2645_v27  ;;  %2170 = vtanh.f32 %v471_v38  ;;  %v1274_v44 = vadd.f32 %v977_v29, %v976_v25  ;;  %v483_v37 = vadd.f32 %v2834_v1, %v169_v36 }
  0x81   :  { %v2157_v33 = vpop.eup %2156  ;;  %2172 = vtanh.f32 %v472_v31  ;;  %v984_v50 = vmul.f32 %v2155_v28, %v2642_v24  ;;  %v170_v28 = vld [vmem:[#allocation5 + $0x368] sm:$0xff] }
  0x82   :  { %1260 = vadd.xlane.f32.xlu1 %v1259_v30  ;;  %v1660_v30 = vlaneseq  ;;  %v2159_v39 = vpop.eup %2158  ;;  %v1280_v48 = vadd.f32 %v981_v35, %v980_v34  ;;  %2174 = vtanh.f32 %v475_v7  ;;  %v985_v53 = vmul.f32 %v2157_v33, %v2645_v27 }
  0x83   :  { %v982_v54 = vmul.f32 %v2159_v39, %v2642_v24  ;;  %2176 = vtanh.f32 %v476_v41  ;;  %v486_v33 = vadd.f32 %v2838_v9, %v172_v19  ;;  %v173_v39 = vld [vmem:[#allocation5 + $0x380] sm:$0xff] }
  0x84   :  { %1257 = vadd.xlane.f32.xlu0 %v1256_v42  ;;  %v2161_v42 = vpop.eup %2160  ;;  %v2856_v49 = vand.u32 127, %v1660_v30  ;;  %2178 = vtanh.f32 %v479_v43  ;;  %v1286_v12 = vadd.f32 %v985_v53, %v984_v50  ;;  %v484_v43 = vadd.f32 %v2838_v9, %v170_v28 }
  0x85   :  { %v2163_v47 = vpop.eup %2162  ;;  %v983_v55 = vmul.f32 %v2161_v42, %v2645_v27  ;;  %2180 = vtanh.f32 %v480_v45 }
  0x86   :  { %1263 = vadd.xlane.f32.xlu2 %v1262_v51  ;;  %v164_v51 = vld [vmem:[#allocation5 + $0x338] sm:$0xff]  ;;  %v2165_v52 = vpop.eup %2164  ;;  %v986_v62 = vmul.f32 %v2163_v47, %v2642_v24  ;;  %v2870_v10 = vadd.s32 4294967280, %v2856_v49  ;;  %v2873_v11 = vadd.s32 4294967264, %v2856_v49  ;;  %v2878_v17 = vadd.s32 4294967272, %v2856_v49 }
  0x87   :  { %v2167_v56 = vpop.eup %2166  ;;  %v478_v58 = vadd.f32 %v2838_v9, %v164_v51  ;;  %v987_v3 = vmul.f32 %v2165_v52, %v2645_v27  ;;  %v1283_v13 = vadd.f32 %v983_v55, %v982_v54  ;;  %v2881_v18 = vadd.s32 4294967288, %v2856_v49 }
  0x88   :  { %v2169_v57 = vpop.eup %2168  ;;  %2182 = vtanh.f32 %v477_v63  ;;  %v2890_v30 = vadd.s32 4294967256, %v2856_v49  ;;  %v2898_v7 = vadd.s32 4294967240, %v2856_v49  ;;  %v2902_v42 = vadd.s32 4294967248, %v2856_v49 }
  0x89   :  { %v991_v0 = vmul.f32 %v2169_v57, %v2645_v27  ;;  %2184 = vtanh.f32 %v478_v58  ;;  %v1289_v38 = vadd.f32 %v987_v3, %v986_v62  ;;  %v2906_v46 = vadd.s32 4294967232, %v2856_v49  ;;  %v177_v57 = vld [vmem:[#allocation5 + $0x3a0] sm:$0xff]  ;;  %v178_v3 = vld [vmem:[#allocation5 + $0x3a8] sm:$0xff] }
  0x8a   :  { %1269 = vadd.xlane.f32.xlu1 %v1268_v60  ;;  %v2171_v60 = vpop.eup %2170  ;;  %2186 = vtanh.f32 %v481_v5  ;;  %v487_v52 = vadd.f32 %v2834_v1, %v173_v39  ;;  %v2916_v63 = vadd.s32 4294967224, %v2856_v49 }
  0x8b   :  { %v2173_v6 = vpop.eup %2172  ;;  %v988_v31 = vmul.f32 %v2171_v60, %v2642_v24  ;;  %2188 = vtanh.f32 %v482_v22 }
  0x8c   :  { %1266 = vadd.xlane.f32.xlu0 %v1265_v14  ;;  %v171_v14 = vld [vmem:[#allocation5 + $0x370] sm:$0xff]  ;;  %v2175_v15 = vpop.eup %2174  ;;  %v989_v32 = vmul.f32 %v2173_v6, %v2645_v27 }
  0x8d   :  { %v2177_v20 = vpop.eup %2176  ;;  %v485_v26 = vadd.f32 %v2834_v1, %v171_v14  ;;  %v992_v34 = vmul.f32 %v2175_v15, %v2642_v24  ;;  %v175_v14 = vld [vmem:[#allocation5 + $0x390] sm:$0xff] }
  0x8e   :  { %1272 = vadd.xlane.f32.xlu2 %v1271_v21  ;;  %v990_v21 = vmul.f32 %v2167_v56, %v2642_v24  ;;  %v2179_v23 = vpop.eup %2178  ;;  %v993_v35 = vmul.f32 %v2177_v20, %v2645_v27  ;;  %v1292_v51 = vadd.f32 %v989_v32, %v988_v31  ;;  %v2913_v56 = vadd.s32 4294967216, %v2856_v49  ;;  %v180_v32 = vld [vmem:[#allocation5 + $0x3b8] sm:$0xff] }
  0x8f   :  { %v2181_v29 = vpop.eup %2180  ;;  %v996_v47 = vmul.f32 %v2179_v23, %v2642_v24  ;;  %2190 = vtanh.f32 %v485_v26  ;;  %v492_v23 = vadd.f32 %v2838_v9, %v178_v3  ;;  %v489_v31 = vadd.f32 %v2834_v1, %v175_v14 }
  0x90   :  { %v1295_v41 = vadd.f32 %v991_v0, %v990_v21  ;;  %2192 = vtanh.f32 %v486_v33  ;;  %v1298_v59 = vadd.f32 %v993_v35, %v992_v34  ;;  %v491_v21 = vadd.f32 %v2834_v1, %v177_v57  ;;  %v176_v0 = vld [vmem:[#allocation5 + $0x398] sm:$0xff] }
  0x91   :  { %2194 = vtanh.f32 %v483_v37  ;;  %v490_v37 = vadd.f32 %v2838_v9, %v176_v0 }
  0x92   :  { %1278 = vadd.xlane.f32.xlu1 %v1277_v40  ;;  %v174_v40 = vld [vmem:[#allocation5 + $0x388] sm:$0xff]  ;;  %2196 = vtanh.f32 %v484_v43 }
  0x93   :  { %v488_v53 = vadd.f32 %v2838_v9, %v174_v40  ;;  %2198 = vtanh.f32 %v487_v52 }
  0x94   :  { %1275 = vadd.xlane.f32.xlu0 %v1274_v44  ;;  %v2183_v44 = vpop.eup %2182 }
  0x95   :  { %v2864_v61 = vpop.xlane.xlu1 %1155  ;;  %v2185_v50 = vpop.eup %2184  ;;  %2200 = vtanh.f32 %v488_v53  ;;  %v184_v53 = vld [vmem:[#allocation5 + $0x3d8] sm:$0xff] }
  0x96   :  { %1281 = vadd.xlane.f32.xlu2 %v1280_v48  ;;  %v997_v48 = vmul.f32 %v2181_v29, %v2645_v27  ;;  %v2187_v54 = vpop.eup %2186  ;;  %v1668_v4 = vperm.slane %v2864_v61, %v2870_v10  ;;  %v2936_v29 = vadd.s32 4294967208, %v2856_v49  ;;  %2202 = vtanh.f32 %v491_v21 }
  0x97   :  { %v2875_v16 = vpop.xlane.xlu0 %1149  ;;  %v2189_v15 = vpop.eup %2188  ;;  %v998_v20 = vmul.f32 %v2187_v54, %v2642_v24  ;;  %2204 = vtanh.f32 %v492_v23  ;;  %v332_v54 = vsel %vm3536_vm12, %v2819_v8, %v2627_v2  ;;  %vm1713_vm12 = vcmask 917312  }
  0x98   :  { %v1662_v58 = vperm.slane %v2875_v16, %v2856_v49  ;;  %v1304_v6 = vadd.f32 %v997_v48, %v996_v47  ;;  %v2191_v61 = vpop.eup %2190  ;;  %v999_v35 = vmul.f32 %v2189_v15, %v2645_v27  ;;  %v494_v48 = vadd.f32 %v2838_v9, %v180_v32 }
  0x99   :  { %v2886_v25 = vpop.xlane.xlu2 %1161  ;;  %v2193_v26 = vpop.eup %2192  ;;  %v1002_v47 = vmul.f32 %v2191_v61, %v2642_v24  ;;  %2206 = vtanh.f32 %v489_v31  ;;  %v498_v15 = vadd.f32 %v2838_v9, %v184_v53 }
  0x9a   :  { %1287 = vadd.xlane.f32.xlu1 %v1286_v12  ;;  %v994_v12 = vmul.f32 %v2183_v44, %v2642_v24  ;;  %v1676_v22 = vperm.slane %v2886_v25, %v2873_v11  ;;  %v2195_v33 = vpop.eup %2194  ;;  %v1003_v52 = vmul.f32 %v2193_v26, %v2645_v27  ;;  %v1307_v57 = vadd.f32 %v999_v35, %v998_v20 }
  0x9b   :  { %v2197_v39 = vpop.eup %2196  ;;  %2208 = vtanh.f32 %v490_v37  ;;  %v2964_v26 = vadd.s32 4294967192, %v2856_v49 }
  0x9c   :  { %1284 = vadd.xlane.f32.xlu0 %v1283_v13  ;;  %v995_v13 = vmul.f32 %v2185_v50, %v2645_v27  ;;  %v183_v50 = vld [vmem:[#allocation5 + $0x3d0] sm:$0xff]  ;;  %v1313_v0 = vadd.f32 %v1003_v52, %v1002_v47  ;;  %v189_v47 = vld [vmem:[#allocation5 + $0x400] sm:$0xff] }
  0x9d   :  { %v1159_v45 = vpop.xlane.xlu1 %1158 }
  0x9e   :  { %1290 = vadd.xlane.f32.xlu2 %v1289_v38  ;;  %v1672_v60 = vperm.slane %v1159_v45, %v2878_v17  ;;  %v179_v38 = vld [vmem:[#allocation5 + $0x3b0] sm:$0xff] }
  0x9f   :  { %v1153_v55 = vpop.xlane.xlu0 %1152  ;;  %v493_v43 = vadd.f32 %v2834_v1, %v179_v38 }
  0xa0   :  { %v1664_v62 = vperm.slane %v1153_v55, %v2881_v18  ;;  %v2199_v55 = vpop.eup %2198 }
  0xa1   :  { %v1165_v5 = vpop.xlane.xlu2 %1164  ;;  %v2201_v3 = vpop.eup %2200  ;;  %2210 = vtanh.f32 %v493_v43  ;;  %v1004_v23 = vmul.f32 %v2199_v55, %v2642_v24  ;;  %v190_v55 = vld [vmem:[#allocation5 + $0x408] sm:$0xff] }
  0xa2   :  { %v1666_v16 = vsel %vm1665_vm4, %v1664_v62, %v1662_v58  ;;  %v1680_v19 = vperm.slane %v1165_v5, %v2890_v30  ;;  %1296 = vadd.xlane.f32.xlu1 %v1295_v41  ;;  %v1301_v41 = vadd.f32 %v995_v13, %v994_v12  ;;  %v1000_v58 = vmul.f32 %v2195_v33, %v2642_v24  ;;  %v181_v62 = vld [vmem:[#allocation5 + $0x3c0] sm:$0xff]  ;;  %v182_v13 = vld [vmem:[#allocation5 + $0x3c8] sm:$0xff]  ;;  %v2203_v20 = vpop.eup %2202 }
  0xa3   :  { %v1670_v36 = vsel %vm1669_vm5, %v1668_v4, %v1666_v16  ;;  %v497_v12 = vadd.f32 %v2834_v1, %v183_v50  ;;  %2212 = vtanh.f32 %v494_v48  ;;  %v185_v16 = vld [vmem:[#allocation5 + $0x3e0] sm:$0xff]  ;;  %v495_v61 = vadd.f32 %v2834_v1, %v181_v62 }
  0xa4   :  { %v1674_v28 = vsel %vm1673_vm6, %v1672_v60, %v1670_v36  ;;  %1293 = vadd.xlane.f32.xlu0 %v1292_v51  ;;  %v1001_v60 = vmul.f32 %v2197_v39, %v2645_v27  ;;  %v1005_v38 = vmul.f32 %v2201_v3, %v2645_v27  ;;  %v2968_v33 = vadd.s32 4294967200, %v2856_v49 }
  0xa5   :  { %v1678_v25 = vsel %vm3539_vm7, %v1676_v22, %v1674_v28  ;;  %v1171_v34 = vpop.xlane.xlu1 %1170  ;;  %v2205_v22 = vpop.eup %2204  ;;  %v496_v28 = vadd.f32 %v2838_v9, %v182_v13  ;;  %2214 = vtanh.f32 %v497_v12 }
  0xa6   :  { %v1682_v40 = vsel %vm1681_vm8, %v1680_v19, %v1678_v25  ;;  %1299 = vadd.xlane.f32.xlu2 %v1298_v59  ;;  %v1688_v44 = vperm.slane %v1171_v34, %v2898_v7  ;;  %v333_v19 = vrot.slane %v332_v54, 4  ;;  %v2207_v31 = vpop.eup %2206  ;;  %v1310_v32 = vadd.f32 %v1001_v60, %v1000_v58  ;;  %v188_v58 = vld [vmem:[#allocation5 + $0x3f8] sm:$0xff] }
  0xa7   :  { %v1168_v45 = vpop.xlane.xlu0 %1167  ;;  %v499_v25 = vadd.f32 %v2834_v1, %v185_v16  ;;  %v2209_v34 = vpop.eup %2208  ;;  %2216 = vtanh.f32 %v498_v15  ;;  %v1316_v52 = vadd.f32 %v1005_v38, %v1004_v23  ;;  %v1009_v53 = vmul.f32 %v2205_v22, %v2645_v27  ;;  %v195_v23 = vld [vmem:[#allocation5 + $0x430] sm:$0xff] }
  0xa8   :  { %v1684_v51 = vperm.slane %v1168_v45, %v2902_v42  ;;  %v2211_v43 = vpop.eup %2210  ;;  %v1008_v45 = vmul.f32 %v2203_v20, %v2642_v24  ;;  %2218 = vtanh.f32 %v495_v61  ;;  %v2977_v48 = vperm.slane %v333_v19, 1 }
  0xa9   :  { %v1174_v59 = vpop.xlane.xlu2 %1173  ;;  %v2213_v50 = vpop.eup %2212  ;;  %v1006_v54 = vmul.f32 %v2207_v31, %v2642_v24  ;;  %2220 = vtanh.f32 %v496_v28  ;;  %v1007_v3 = vmul.f32 %v2209_v34, %v2645_v27  ;;  %v2996_v22 = vadd.s32 4294967176, %v2856_v49  ;;  %v196_v34 = vld [vmem:[#allocation5 + $0x438] sm:$0xff] }
  0xaa   :  { %v1686_v4 = vsel %vm1685_vm9, %v1684_v51, %v1682_v40  ;;  %v1692_v5 = vperm.slane %v1174_v59, %v2906_v46  ;;  %1305 = vadd.xlane.f32.xlu1 %v1304_v6  ;;  %v186_v6 = vld [vmem:[#allocation5 + $0x3e8] sm:$0xff]  ;;  %v2973_v40 = vperm.slane %v333_v19, 0  ;;  %2222 = vtanh.f32 %v499_v25  ;;  %v192_v19 = vld [vmem:[#allocation5 + $0x418] sm:$0xff] }
  0xab   :  { %v1690_v14 = vsel %vm1689_vm10, %v1688_v44, %v1686_v4  ;;  %v500_v39 = vadd.f32 %v2838_v9, %v186_v6  ;;  %v2215_v12 = vpop.eup %2214  ;;  %v1011_v15 = vmul.f32 %v2213_v50, %v2645_v27  ;;  %v504_v16 = vadd.f32 %v2977_v48, %v190_v55  ;;  %v197_v55 = vld [vmem:[#allocation5 + $0x440] sm:$0xff] }
  0xac   :  { %v1694_v21 = vsel %vm1693_vm11, %v1692_v5, %v1690_v14  ;;  %1302 = vadd.xlane.f32.xlu0 %v1301_v41  ;;  %v187_v41 = vld [vmem:[#allocation5 + $0x3f0] sm:$0xff]  ;;  %v503_v4 = vadd.f32 %v2973_v40, %v189_v47  ;;  %v1010_v14 = vmul.f32 %v2211_v43, %v2642_v24  ;;  %v1322_v6 = vadd.f32 %v1009_v53, %v1008_v45 }
  0xad   :  { %v1180_v36 = vpop.xlane.xlu1 %1179  ;;  %v501_v60 = vadd.f32 %v2834_v1, %v187_v41  ;;  %2224 = vtanh.f32 %v500_v39  ;;  %v191_v5 = vld [vmem:[#allocation5 + $0x410] sm:$0xff]  ;;  %v2217_v1 = vpop.eup %2216  ;;  %v506_v25 = vadd.f32 %v2977_v48, %v192_v19  ;;  %v1014_v39 = vmul.f32 %v2215_v12, %v2642_v24  ;;  %v193_v41 = vld [vmem:[#allocation5 + $0x420] sm:$0xff] }
  0xae   :  { %1308 = vadd.xlane.f32.xlu2 %v1307_v57  ;;  %v1700_v35 = vperm.slane %v1180_v36, %v2913_v56  ;;  %v2219_v61 = vpop.eup %2218  ;;  %v505_v36 = vadd.f32 %v2973_v40, %v191_v5  ;;  %v1015_v45 = vmul.f32 %v2217_v1, %v2645_v27  ;;  %v509_v50 = vadd.f32 %v2973_v40, %v195_v23 }
  0xaf   :  { %v1177_v37 = vpop.xlane.xlu0 %1176  ;;  %2226 = vtanh.f32 %v501_v60  ;;  %v2221_v38 = vpop.eup %2220  ;;  %v1012_v47 = vmul.f32 %v2219_v61, %v2642_v24  ;;  %v198_v60 = vld [vmem:[#allocation5 + $0x448] sm:$0xff] }
  0xb0   :  { %v1696_v44 = vperm.slane %v1177_v37, %v2916_v63  ;;  %2228 = vtanh.f32 %v503_v4  ;;  %v1325_v37 = vadd.f32 %v1011_v15, %v1010_v14  ;;  %v511_v15 = vadd.f32 %v2973_v40, %v197_v55 }
  0xb1   :  { %v1183_v51 = vpop.xlane.xlu2 %1182  ;;  %2230 = vtanh.f32 %v504_v16  ;;  %v1331_v19 = vadd.f32 %v1015_v45, %v1014_v39  ;;  %v512_v1 = vadd.f32 %v2977_v48, %v198_v60  ;;  %v200_v39 = vld [vmem:[#allocation5 + $0x458] sm:$0xff]  ;;  %v203_v45 = vld [vmem:[#allocation5 + $0x470] sm:$0xff] }
  0xb2   :  { %v1698_v59 = vsel %vm1697_vm13, %v1696_v44, %v1694_v21  ;;  %v1704_v57 = vperm.slane %v1183_v51, %v2936_v29  ;;  %1314 = vadd.xlane.f32.xlu1 %v1313_v0  ;;  %v2992_v21 = vadd.s32 4294967184, %v2856_v49  ;;  %v502_v0 = vadd.f32 %v2838_v9, %v188_v58  ;;  %v2223_v9 = vpop.eup %2222  ;;  %v194_v51 = vld [vmem:[#allocation5 + $0x428] sm:$0xff] }
  0xb3   :  { %v1702_v62 = vsel %vm1701_vm14, %v1700_v35, %v1698_v59  ;;  %v2225_v43 = vpop.eup %2224  ;;  %v507_v58 = vadd.f32 %v2973_v40, %v193_v41  ;;  %v1016_v4 = vmul.f32 %v2223_v9, %v2642_v24  ;;  %v508_v12 = vadd.f32 %v2977_v48, %v194_v51 }
  0xb4   :  { %v1706_v13 = vsel %vm1705_vm15, %v1704_v57, %v1702_v62  ;;  %1311 = vadd.xlane.f32.xlu0 %v1310_v32  ;;  %v1319_v32 = vadd.f32 %v1007_v3, %v1006_v54  ;;  %2232 = vtanh.f32 %v502_v0  ;;  %v510_v54 = vadd.f32 %v2977_v48, %v196_v34 }
  0xb5   :  { %v1189_v20 = vpop.xlane.xlu1 %1188  ;;  %2234 = vtanh.f32 %v505_v36  ;;  %v1013_v57 = vmul.f32 %v2221_v38, %v2645_v27  ;;  %v2227_v62 = vpop.eup %2226  ;;  %v1017_v5 = vmul.f32 %v2225_v43, %v2645_v27  ;;  %v202_v36 = vld [vmem:[#allocation5 + $0x468] sm:$0xff] }
  0xb6   :  { %1317 = vadd.xlane.f32.xlu2 %v1316_v52  ;;  %v1712_v28 = vperm.slane %v1189_v20, %v2964_v26  ;;  %2236 = vtanh.f32 %v506_v25  ;;  %v201_v20 = vld [vmem:[#allocation5 + $0x460] sm:$0xff] }
  0xb7   :  { %v1186_v31 = vpop.xlane.xlu0 %1185  ;;  %2238 = vtanh.f32 %v509_v50  ;;  %v1018_v50 = vmul.f32 %v2227_v62, %v2642_v24  ;;  %v517_v62 = vadd.f32 %v2973_v40, %v203_v45 }
  0xb8   :  { %v1708_v35 = vperm.slane %v1186_v31, %v2968_v33  ;;  %2240 = vtanh.f32 %v510_v54  ;;  %v1334_v31 = vadd.f32 %v1017_v5, %v1016_v4 }
  0xb9   :  { %v1192_v44 = vpop.xlane.xlu2 %1191  ;;  %2242 = vtanh.f32 %v507_v58  ;;  %v514_v58 = vadd.f32 %v2977_v48, %v200_v39 }
  0xba   :  { %v1710_v52 = vsel %vm1709_vm0, %v1708_v35, %v1706_v13  ;;  %v1716_v53 = vperm.slane %v1192_v44, %v2992_v21  ;;  %1323 = vadd.xlane.f32.xlu1 %v1322_v6  ;;  %v2229_v13 = vpop.eup %2228  ;;  %v1328_v6 = vadd.f32 %v1013_v57, %v1012_v47  ;;  %2244 = vtanh.f32 %v508_v12 }
  0xbb   :  { %v1714_v59 = vsel %vm1713_vm12, %v1712_v28, %v1710_v52  ;;  %v2231_v16 = vpop.eup %2230  ;;  %v1020_v9 = vmul.f32 %v2229_v13, %v2642_v24  ;;  %2246 = vtanh.f32 %v511_v15  ;;  %v516_v44 = vadd.f32 %v2977_v48, %v202_v36 }
  0xbc   :  { %v1718_v3 = vsel %vm1717_vm3, %v1716_v53, %v1714_v59  ;;  %1320 = vadd.xlane.f32.xlu0 %v1319_v32  ;;  %v2233_v0 = vpop.eup %2232  ;;  %v199_v32 = vld [vmem:[#allocation5 + $0x450] sm:$0xff]  ;;  %v1021_v35 = vmul.f32 %v2231_v16, %v2645_v27  ;;  %2248 = vtanh.f32 %v512_v1  ;;  %v204_v53 = vld [vmem:[#allocation5 + $0x478] sm:$0xff] }
  0xbd   :  { %v1198_v14 = vpop.xlane.xlu1 %1197  ;;  %v2235_v23 = vpop.eup %2234  ;;  %v1019_v51 = vmul.f32 %v2233_v0, %v2645_v27  ;;  %v513_v52 = vadd.f32 %v2973_v40, %v199_v32  ;;  %v518_v12 = vadd.f32 %v2977_v48, %v204_v53 }
  0xbe   :  { %1326 = vadd.xlane.f32.xlu2 %v1325_v37  ;;  %v1723_v38 = vperm.slane %v1198_v14, %v2856_v49  ;;  %v2237_v25 = vpop.eup %2236  ;;  %v515_v37 = vadd.f32 %v2973_v40, %v201_v20  ;;  %v1022_v59 = vmul.f32 %v2235_v23, %v2642_v24  ;;  %v1340_v5 = vadd.f32 %v1021_v35, %v1020_v9  ;;  %v206_v9 = vld [vmem:[#allocation5 + $0x488] sm:$0xff] }
  0xbf   :  { %v1195_v61 = vpop.xlane.xlu0 %1194  ;;  %v2239_v47 = vpop.eup %2238  ;;  %v1023_v57 = vmul.f32 %v2237_v25, %v2645_v27  ;;  %v1337_v16 = vadd.f32 %v1019_v51, %v1018_v50  ;;  %v209_v51 = vld [vmem:[#allocation5 + $0x4a0] sm:$0xff] }
  0xc0   :  { %v1720_v28 = vperm.slane %v1195_v61, %v2996_v22  ;;  %v2241_v54 = vpop.eup %2240  ;;  %2250 = vtanh.f32 %v515_v37  ;;  %v1026_v61 = vmul.f32 %v2239_v47, %v2642_v24 }
  0xc1   :  { %v1201_v34 = vpop.xlane.xlu2 %1200  ;;  %v2243_v60 = vpop.eup %2242  ;;  %2252 = vtanh.f32 %v516_v44  ;;  %v1343_v0 = vadd.f32 %v1023_v57, %v1022_v59  ;;  %v1027_v23 = vmul.f32 %v2241_v54, %v2645_v27  ;;  %v520_v54 = vadd.f32 %v2977_v48, %v206_v9 }
  0xc2   :  { %v3024_v41 = vsel %vm1721_vm2, %v1720_v28, %v1718_v3  ;;  %v1724_v43 = vperm.slane %v1201_v34, %v2881_v18  ;;  %1332 = vadd.xlane.f32.xlu1 %v1331_v19  ;;  %v2245_v4 = vpop.eup %2244  ;;  %2254 = vtanh.f32 %v513_v52  ;;  %v207_v19 = vld [vmem:[#allocation5 + $0x490] sm:$0xff] }
  0xc3   :  { %v2247_v13 = vpop.eup %2246  ;;  %2256 = vtanh.f32 %v514_v58  ;;  %v1025_v28 = vmul.f32 %v2245_v4, %v2645_v27  ;;  %v521_v34 = vadd.f32 %v2973_v40, %v207_v19  ;;  %v1349_v57 = vadd.f32 %v1027_v23, %v1026_v61 }
  0xc4   :  { %v1725_v55 = vsel %vm1665_vm4, %v1724_v43, %v1723_v38  ;;  %1329 = vadd.xlane.f32.xlu0 %v1328_v6  ;;  %v2249_v1 = vpop.eup %2248  ;;  %v208_v6 = vld [vmem:[#allocation5 + $0x498] sm:$0xff]  ;;  %v1024_v38 = vmul.f32 %v2243_v60, %v2642_v24  ;;  %2258 = vtanh.f32 %v517_v62  ;;  %v1028_v39 = vmul.f32 %v2247_v13, %v2642_v24 }
  0xc5   :  { %v1207_v3 = vpop.xlane.xlu1 %1206  ;;  %2260 = vtanh.f32 %v518_v12  ;;  %v1029_v43 = vmul.f32 %v2249_v1, %v2645_v27  ;;  %v522_v44 = vadd.f32 %v2977_v48, %v208_v6 }
  0xc6   :  { %1335 = vadd.xlane.f32.xlu2 %v1334_v31  ;;  %v1728_v14 = vperm.slane %v1207_v3, %v2878_v17  ;;  %v205_v31 = vld [vmem:[#allocation5 + $0x480] sm:$0xff]  ;;  %v2251_v35 = vpop.eup %2250  ;;  %v1346_v58 = vadd.f32 %v1025_v28, %v1024_v38  ;;  %2262 = vtanh.f32 %v521_v34  ;;  %v211_v38 = vld [vmem:[#allocation5 + $0x4b0] sm:$0xff] }
  0xc7   :  { %v1204_v15 = vpop.xlane.xlu0 %1203  ;;  %v2253_v45 = vpop.eup %2252  ;;  %v519_v50 = vadd.f32 %v2973_v40, %v205_v31  ;;  %v1352_v4 = vadd.f32 %v1029_v43, %v1028_v39  ;;  %2264 = vtanh.f32 %v522_v44 }
  0xc8   :  { %v1726_v20 = vperm.slane %v1204_v15, %v2870_v10  ;;  %v2255_v52 = vpop.eup %2254  ;;  %v1033_v1 = vmul.f32 %v2253_v45, %v2645_v27  ;;  %v525_v45 = vadd.f32 %v2973_v40, %v211_v38 }
  0xc9   :  { %v1210_v36 = vpop.xlane.xlu2 %1209  ;;  %v2257_v59 = vpop.eup %2256  ;;  %2266 = vtanh.f32 %v519_v50 }
  0xca   :  { %v1727_v32 = vsel %vm1669_vm5, %v1726_v20, %v1725_v55  ;;  %v1730_v25 = vperm.slane %v1210_v36, %v2873_v11  ;;  %1341 = vadd.xlane.f32.xlu1 %v1340_v5  ;;  %v210_v55 = vld [vmem:[#allocation5 + $0x4a8] sm:$0xff]  ;;  %v2259_v60 = vpop.eup %2258  ;;  %v523_v5 = vadd.f32 %v2973_v40, %v209_v51  ;;  %v1030_v20 = vmul.f32 %v2255_v52, %v2642_v24 }
  0xcb   :  { %v1729_v37 = vsel %vm1673_vm6, %v1728_v14, %v1727_v32  ;;  %v2261_v12 = vpop.eup %2260  ;;  %v1032_v14 = vmul.f32 %v2251_v35, %v2642_v24  ;;  %v524_v15 = vadd.f32 %v2977_v48, %v210_v55  ;;  %2268 = vtanh.f32 %v520_v54 }
  0xcc   :  { %v1731_v47 = vsel %vm3539_vm7, %v1730_v25, %v1729_v37  ;;  %1338 = vadd.xlane.f32.xlu0 %v1337_v16  ;;  %v213_v16 = vld [vmem:[#allocation5 + $0x4c0] sm:$0xff]  ;;  %vm3541_vm7 = vcmask 1045509   ;;  %v1031_v36 = vmul.f32 %v2257_v59, %v2645_v27  ;;  %v1034_v23 = vmul.f32 %v2259_v60, %v2642_v24  ;;  %v212_v25 = vld [vmem:[#allocation5 + $0x4b8] sm:$0xff]  ;;  %v2263_v34 = vpop.eup %2262  ;;  %v215_v37 = vld [vmem:[#allocation5 + $0x4d0] sm:$0xff] }
  0xcd   :  { %v1216_v53 = vpop.xlane.xlu1 %1215  ;;  %v1035_v31 = vmul.f32 %v2261_v12, %v2645_v27  ;;  %2270 = vtanh.f32 %v523_v5  ;;  %v527_v32 = vadd.f32 %v2973_v40, %v213_v16  ;;  %v335_v39 = vsel %vm3541_vm7, %v2819_v8, %v2627_v2  ;;  %v2265_v43 = vpop.eup %2264 }
  0xce   :  { %1344 = vadd.xlane.f32.xlu2 %v1343_v0  ;;  %v1734_v3 = vperm.slane %v1216_v53, %v2902_v42  ;;  %v214_v0 = vld [vmem:[#allocation5 + $0x4c8] sm:$0xff]  ;;  %2272 = vtanh.f32 %v524_v15  ;;  %v1358_v51 = vadd.f32 %v1033_v1, %v1032_v14  ;;  %v1355_v52 = vadd.f32 %v1031_v36, %v1030_v20  ;;  %v220_v15 = vld [vmem:[#allocation5 + $0x4f8] sm:$0xff] }
  0xcf   :  { %v1213_v62 = vpop.xlane.xlu0 %1212  ;;  %v528_v35 = vadd.f32 %v2977_v48, %v214_v0  ;;  %v2267_v50 = vpop.eup %2266  ;;  %v526_v53 = vadd.f32 %v2977_v48, %v212_v25  ;;  %2274 = vtanh.f32 %v527_v32  ;;  %v1361_v60 = vadd.f32 %v1035_v31, %v1034_v23  ;;  %v217_v0 = vld [vmem:[#allocation5 + $0x4e0] sm:$0xff]  ;;  %v218_v36 = vld [vmem:[#allocation5 + $0x4e8] sm:$0xff] }
  0xd0   :  { %v1732_v13 = vperm.slane %v1213_v62, %v2890_v30  ;;  %v219_v62 = vld [vmem:[#allocation5 + $0x4f0] sm:$0xff]  ;;  %v1038_v12 = vmul.f32 %v2263_v34, %v2642_v24  ;;  %v1036_v14 = vmul.f32 %v2267_v50, %v2642_v24  ;;  %v221_v31 = vld [vmem:[#allocation5 + $0x500] sm:$0xff]  ;;  %vm3544_vm7 = vcmask 326912  }
  0xd1   :  { %v1219_v19 = vpop.xlane.xlu2 %1218  ;;  %v2269_v54 = vpop.eup %2268  ;;  %2276 = vtanh.f32 %v528_v35 }
  0xd2   :  { %v1733_v61 = vsel %vm1681_vm8, %v1732_v13, %v1731_v47  ;;  %v1736_v6 = vperm.slane %v1219_v19, %v2898_v7  ;;  %1350 = vadd.xlane.f32.xlu1 %v1349_v57  ;;  %v216_v47 = vld [vmem:[#allocation5 + $0x4d8] sm:$0xff]  ;;  %v529_v57 = vadd.f32 %v2973_v40, %v215_v37  ;;  %v1039_v13 = vmul.f32 %v2265_v43, %v2645_v27 }
  0xd3   :  { %v1735_v28 = vsel %vm1685_vm9, %v1734_v3, %v1733_v61  ;;  %v530_v3 = vadd.f32 %v2977_v48, %v216_v47  ;;  %2278 = vtanh.f32 %v525_v45  ;;  %v1037_v20 = vmul.f32 %v2269_v54, %v2645_v27 }
  0xd4   :  { %v1737_v9 = vsel %vm1689_vm10, %v1736_v6, %v1735_v28  ;;  %1347 = vadd.xlane.f32.xlu0 %v1346_v58  ;;  %v336_v58 = vrot.slane %v335_v39, 5  ;;  %2280 = vtanh.f32 %v526_v53  ;;  %v533_v6 = vadd.f32 %v2973_v40, %v219_v62  ;;  %v222_v39 = vld [vmem:[#allocation5 + $0x508] sm:$0xff]  ;;  %v225_v53 = vld [vmem:[#allocation5 + $0x520] sm:$0xff]  ;;  %v223_v62 = vld [vmem:[#allocation5 + $0x510] sm:$0xff] }
  0xd5   :  { %v1225_v44 = vpop.xlane.xlu1 %1224  ;;  %2282 = vtanh.f32 %v529_v57  ;;  %v534_v28 = vadd.f32 %v2977_v48, %v220_v15  ;;  %v531_v37 = vadd.f32 %v2973_v40, %v217_v0  ;;  %v532_v45 = vadd.f32 %v2977_v48, %v218_v36  ;;  %v226_v57 = vld [vmem:[#allocation5 + $0x528] sm:$0xff] }
  0xd6   :  { %1353 = vadd.xlane.f32.xlu2 %v1352_v4  ;;  %v1740_v55 = vperm.slane %v1225_v44, %v2916_v63  ;;  %v2271_v4 = vpop.eup %2270  ;;  %v3086_v23 = vperm.slane %v336_v58, 0  ;;  %2284 = vtanh.f32 %v530_v3  ;;  %v3090_v32 = vperm.slane %v336_v58, 1 }
  0xd7   :  { %v1222_v59 = vpop.xlane.xlu0 %1221  ;;  %v2273_v16 = vpop.eup %2272  ;;  %v1367_v44 = vadd.f32 %v1039_v13, %v1038_v12  ;;  %2286 = vtanh.f32 %v533_v6  ;;  %v228_v6 = vld [vmem:[#allocation5 + $0x538] sm:$0xff] }
  0xd8   :  { %v1738_v8 = vperm.slane %v1222_v59, %v2906_v46  ;;  %v2275_v25 = vpop.eup %2274  ;;  %v1041_v35 = vmul.f32 %v2273_v16, %v2645_v27  ;;  %v1364_v59 = vadd.f32 %v1037_v20, %v1036_v14  ;;  %2288 = vtanh.f32 %v534_v28  ;;  %v224_v14 = vld [vmem:[#allocation5 + $0x518] sm:$0xff] }
  0xd9   :  { %v1228_v5 = vpop.xlane.xlu2 %1227  ;;  %v2277_v43 = vpop.eup %2276  ;;  %v536_v40 = vadd.f32 %v3090_v32, %v222_v39  ;;  %v1044_v48 = vmul.f32 %v2275_v25, %v2642_v24  ;;  %2290 = vtanh.f32 %v531_v37  ;;  %v539_v13 = vadd.f32 %v3086_v23, %v225_v53  ;;  %v231_v37 = vld [vmem:[#allocation5 + $0x550] sm:$0xff]  ;;  %v229_v53 = vld [vmem:[#allocation5 + $0x540] sm:$0xff] }
  0xda   :  { %v1739_v19 = vsel %vm1693_vm11, %v1738_v8, %v1737_v9  ;;  %v1742_v1 = vperm.slane %v1228_v5, %v2913_v56  ;;  %1359 = vadd.xlane.f32.xlu1 %v1358_v51  ;;  %v1040_v9 = vmul.f32 %v2271_v4, %v2642_v24  ;;  %v2279_v47 = vpop.eup %2278  ;;  %v1045_v3 = vmul.f32 %v2277_v43, %v2645_v27 }
  0xdb   :  { %v1741_v61 = vsel %vm1697_vm13, %v1740_v55, %v1739_v19  ;;  %v2281_v54 = vpop.eup %2280  ;;  %2292 = vtanh.f32 %v532_v45  ;;  %v1042_v16 = vmul.f32 %v2279_v47, %v2642_v24  ;;  %v540_v19 = vadd.f32 %v3090_v32, %v226_v57  ;;  %v232_v47 = vld [vmem:[#allocation5 + $0x558] sm:$0xff] }
  0xdc   :  { %v1743_v38 = vsel %vm1701_vm14, %v1742_v1, %v1741_v61  ;;  %1356 = vadd.xlane.f32.xlu0 %v1355_v52  ;;  %v535_v52 = vadd.f32 %v3086_v23, %v221_v31  ;;  %v2283_v58 = vpop.eup %2282  ;;  %v227_v1 = vld [vmem:[#allocation5 + $0x530] sm:$0xff]  ;;  %v1043_v0 = vmul.f32 %v2281_v54, %v2645_v27  ;;  %v537_v61 = vadd.f32 %v3086_v23, %v223_v62  ;;  %v233_v62 = vld [vmem:[#allocation5 + $0x560] sm:$0xff] }
  0xdd   :  { %v1234_v34 = vpop.xlane.xlu1 %1233  ;;  %v2285_v4 = vpop.eup %2284  ;;  %v1046_v28 = vmul.f32 %v2283_v58, %v2642_v24  ;;  %v538_v25 = vadd.f32 %v3090_v32, %v224_v14  ;;  %v542_v45 = vadd.f32 %v3090_v32, %v228_v6  ;;  %v545_v57 = vadd.f32 %v3086_v23, %v231_v37  ;;  %v230_v58 = vld [vmem:[#allocation5 + $0x548] sm:$0xff] }
  0xde   :  { %1362 = vadd.xlane.f32.xlu2 %v1361_v60  ;;  %v1746_v50 = vperm.slane %v1234_v34, %v2968_v33  ;;  %v1370_v60 = vadd.f32 %v1041_v35, %v1040_v9  ;;  %2294 = vtanh.f32 %v535_v52  ;;  %v2287_v36 = vpop.eup %2286  ;;  %v1047_v31 = vmul.f32 %v2285_v4, %v2645_v27 }
  0xdf   :  { %v1231_v51 = vpop.xlane.xlu0 %1230  ;;  %2296 = vtanh.f32 %v536_v40  ;;  %v2289_v34 = vpop.eup %2288  ;;  %v1376_v9 = vadd.f32 %v1045_v3, %v1044_v48  ;;  %v541_v35 = vadd.f32 %v3086_v23, %v227_v1  ;;  %v1373_v52 = vadd.f32 %v1043_v0, %v1042_v16 }
  0xe0   :  { %v1744_v55 = vperm.slane %v1231_v51, %v2936_v29  ;;  %2298 = vtanh.f32 %v539_v13  ;;  %v2291_v39 = vpop.eup %2290  ;;  %v1050_v40 = vmul.f32 %v2287_v36, %v2642_v24  ;;  %v1051_v48 = vmul.f32 %v2289_v34, %v2645_v27 }
  0xe1   :  { %v1237_v8 = vpop.xlane.xlu2 %1236  ;;  %2300 = vtanh.f32 %v540_v19  ;;  %v546_v3 = vadd.f32 %v3090_v32, %v232_v47  ;;  %v1048_v14 = vmul.f32 %v2291_v39, %v2642_v24  ;;  %v544_v16 = vadd.f32 %v3090_v32, %v230_v58 }
  0xe2   :  { %v1745_v5 = vsel %vm1705_vm15, %v1744_v55, %v1743_v38  ;;  %v1748_v12 = vperm.slane %v1237_v8, %v2964_v26  ;;  %1368 = vadd.xlane.f32.xlu1 %v1367_v44  ;;  %2302 = vtanh.f32 %v537_v61  ;;  %v547_v6 = vadd.f32 %v3086_v23, %v233_v62 }
  0xe3   :  { %v1747_v15 = vsel %vm1709_vm0, %v1746_v50, %v1745_v5  ;;  %v2293_v50 = vpop.eup %2292  ;;  %2304 = vtanh.f32 %v538_v25  ;;  %v543_v5 = vadd.f32 %v3086_v23, %v229_v53 }
  0xe4   :  { %v1749_v20 = vsel %vm1713_vm12, %v1748_v12, %v1747_v15  ;;  %1365 = vadd.xlane.f32.xlu0 %v1364_v59  ;;  %v2295_v54 = vpop.eup %2294  ;;  %v1379_v59 = vadd.f32 %v1047_v31, %v1046_v28  ;;  %2306 = vtanh.f32 %v541_v35  ;;  %v234_v12 = vld [vmem:[#allocation5 + $0x568] sm:$0xff]  ;;  %v1049_v15 = vmul.f32 %v2293_v50, %v2645_v27 }
  0xe5   :  { %v1243_v38 = vpop.xlane.xlu1 %1242  ;;  %v2297_v8 = vpop.eup %2296  ;;  %2308 = vtanh.f32 %v542_v45  ;;  %v1052_v0 = vmul.f32 %v2295_v54, %v2642_v24  ;;  %v1385_v28 = vadd.f32 %v1051_v48, %v1050_v40  ;;  %v548_v31 = vadd.f32 %v3090_v32, %v234_v12  ;;  %v239_v12 = vld [vmem:[#allocation5 + $0x590] sm:$0xff] }
  0xe6   :  { %1371 = vadd.xlane.f32.xlu2 %v1370_v60  ;;  %v1752_v43 = vperm.slane %v1243_v38, %v2996_v22  ;;  %v2299_v13 = vpop.eup %2298  ;;  %v1053_v61 = vmul.f32 %v2297_v8, %v2645_v27  ;;  %2310 = vtanh.f32 %v545_v57  ;;  %v1382_v39 = vadd.f32 %v1049_v15, %v1048_v14 }
  0xe7   :  { %v1240_v44 = vpop.xlane.xlu0 %1239  ;;  %v2301_v1 = vpop.eup %2300  ;;  %2312 = vtanh.f32 %v546_v3  ;;  %v1056_v50 = vmul.f32 %v2299_v13, %v2642_v24 }
  0xe8   :  { %v1750_v51 = vperm.slane %v1240_v44, %v2992_v21  ;;  %v2303_v36 = vpop.eup %2302  ;;  %2314 = vtanh.f32 %v543_v5  ;;  %v1388_v47 = vadd.f32 %v1053_v61, %v1052_v0 }
  0xe9   :  { %v1246_v55 = vpop.xlane.xlu2 %1245  ;;  %v2305_v25 = vpop.eup %2304  ;;  %2316 = vtanh.f32 %v544_v16  ;;  %v1054_v58 = vmul.f32 %v2303_v36, %v2642_v24  ;;  %v240_v16 = vld [vmem:[#allocation5 + $0x598] sm:$0xff] }
  0xea   :  { %v1751_v60 = vsel %vm1717_vm3, %v1750_v51, %v1749_v20  ;;  %1377 = vadd.xlane.f32.xlu1 %v1376_v9  ;;  %v1754_v38 = vperm.slane %v1246_v55, %v2856_v49  ;;  %v237_v9 = vld [vmem:[#allocation5 + $0x580] sm:$0xff]  ;;  %v2307_v35 = vpop.eup %2306  ;;  %v1057_v51 = vmul.f32 %v2301_v1, %v2645_v27  ;;  %2318 = vtanh.f32 %v547_v6 }
  0xeb   :  { %v1753_v4 = vsel %vm1721_vm2, %v1752_v43, %v1751_v60  ;;  %v238_v43 = vld [vmem:[#allocation5 + $0x588] sm:$0xff]  ;;  %v2309_v44 = vpop.eup %2308  ;;  %2320 = vtanh.f32 %v548_v31  ;;  %v551_v55 = vadd.f32 %v3086_v23, %v237_v9  ;;  %v1055_v8 = vmul.f32 %v2305_v25, %v2645_v27 }
  0xec   :  { %1374 = vadd.xlane.f32.xlu0 %v1373_v52  ;;  %v3130_v19 = vsel %vm322_vm1, %v1753_v4, %v3024_v41  ;;  %v235_v52 = vld [vmem:[#allocation5 + $0x570] sm:$0xff]  ;;  %v2311_v40 = vpop.eup %2310  ;;  %v552_v60 = vadd.f32 %v3090_v32, %v238_v43  ;;  %v1058_v62 = vmul.f32 %v2307_v35, %v2642_v24  ;;  %v1059_v4 = vmul.f32 %v2309_v44, %v2645_v27  ;;  %v244_v43 = vld [vmem:[#allocation5 + $0x5b8] sm:$0xff] }
  0xed   :  { %v1252_v20 = vpop.xlane.xlu1 %1251  ;;  %v2313_v48 = vpop.eup %2312  ;;  %v549_v5 = vadd.f32 %v3086_v23, %v235_v52  ;;  %2322 = vtanh.f32 %v551_v55  ;;  %v1391_v36 = vadd.f32 %v1055_v8, %v1054_v58  ;;  %v1062_v35 = vmul.f32 %v2311_v40, %v2642_v24  ;;  %v242_v55 = vld [vmem:[#allocation5 + $0x5a8] sm:$0xff]  ;;  %v245_v58 = vld [vmem:[#allocation5 + $0x5c0] sm:$0xff] }
  0xee   :  { %1380 = vadd.xlane.f32.xlu2 %v1379_v59  ;;  %v1757_v41 = vperm.slane %v1252_v20, %v2870_v10  ;;  %v236_v59 = vld [vmem:[#allocation5 + $0x578] sm:$0xff]  ;;  %v2315_v13 = vpop.eup %2314  ;;  %v1394_v20 = vadd.f32 %v1057_v51, %v1056_v50  ;;  %2324 = vtanh.f32 %v552_v60  ;;  %v1397_v25 = vadd.f32 %v1059_v4, %v1058_v62  ;;  %v241_v51 = vld [vmem:[#allocation5 + $0x5a0] sm:$0xff] }
  0xef   :  { %v1249_v34 = vpop.xlane.xlu0 %1248  ;;  %v550_v15 = vadd.f32 %v3090_v32, %v236_v59  ;;  %v2317_v1 = vpop.eup %2316  ;;  %2326 = vtanh.f32 %v549_v5  ;;  %vm3542_vm1 = vcmask 326912  }
  0xf0   :  { %v1755_v37 = vperm.slane %v1249_v34, %v2881_v18  ;;  %v2319_v0 = vpop.eup %2318  ;;  %v243_v34 = vld [vmem:[#allocation5 + $0x5b0] sm:$0xff] }
  0xf1   :  { %v1255_v45 = vpop.xlane.xlu2 %1254  ;;  %2328 = vtanh.f32 %v550_v15  ;;  %v1064_v50 = vmul.f32 %v2319_v0, %v2642_v24 }
  0xf2   :  { %v1756_v53 = vsel %vm1665_vm4, %v1755_v37, %v1754_v38  ;;  %v1759_v54 = vperm.slane %v1255_v45, %v2878_v17  ;;  %1386 = vadd.xlane.f32.xlu1 %v1385_v28  ;;  %v553_v38 = vadd.f32 %v3086_v23, %v239_v12  ;;  %v2321_v28 = vpop.eup %2320  ;;  %v1063_v37 = vmul.f32 %v2313_v48, %v2645_v27 }
  0xf3   :  { %v1758_v57 = vsel %vm1669_vm5, %v1757_v41, %v1756_v53  ;;  %v554_v41 = vadd.f32 %v3090_v32, %v240_v16  ;;  %v1065_v53 = vmul.f32 %v2321_v28, %v2645_v27  ;;  %v2323_v59 = vpop.eup %2322  ;;  %v555_v48 = vadd.f32 %v3086_v23, %v241_v51 }
  0xf4   :  { %v1760_v3 = vsel %vm1673_vm6, %v1759_v54, %v1758_v57  ;;  %1383 = vadd.xlane.f32.xlu0 %v1382_v39  ;;  %v1060_v39 = vmul.f32 %v2315_v13, %v2642_v24  ;;  %2330 = vtanh.f32 %v553_v38  ;;  %v557_v54 = vadd.f32 %v3086_v23, %v243_v34  ;;  %v2325_v8 = vpop.eup %2324  ;;  %v250_v34 = vld [vmem:[#allocation5 + $0x5e8] sm:$0xff] }
  0xf5   :  { %v1261_v14 = vpop.xlane.xlu1 %1260  ;;  %2332 = vtanh.f32 %v554_v41  ;;  %v558_v57 = vadd.f32 %v3090_v32, %v244_v43  ;;  %v2327_v62 = vpop.eup %2326  ;;  %v1403_v4 = vadd.f32 %v1063_v37, %v1062_v35  ;;  %v556_v12 = vadd.f32 %v3090_v32, %v242_v55  ;;  %v247_v43 = vld [vmem:[#allocation5 + $0x5d0] sm:$0xff] }
  0xf6   :  { %1389 = vadd.xlane.f32.xlu2 %v1388_v47  ;;  %v1763_v61 = vperm.slane %v1261_v14, %v2890_v30  ;;  %v1061_v47 = vmul.f32 %v2317_v1, %v2645_v27  ;;  %v1406_v16 = vadd.f32 %v1065_v53, %v1064_v50  ;;  %2334 = vtanh.f32 %v557_v54  ;;  %v251_v53 = vld [vmem:[#allocation5 + $0x5f0] sm:$0xff] }
  0xf7   :  { %v1258_v6 = vpop.xlane.xlu0 %1257  ;;  %v2329_v13 = vpop.eup %2328  ;;  %v559_v1 = vadd.f32 %v3086_v23, %v245_v58  ;;  %2336 = vtanh.f32 %v558_v57  ;;  %v1066_v41 = vmul.f32 %v2327_v62, %v2642_v24  ;;  %v561_v57 = vadd.f32 %v3086_v23, %v247_v43  ;;  %v252_v58 = vld [vmem:[#allocation5 + $0x5f8] sm:$0xff] }
  0xf8   :  { %v1761_v31 = vperm.slane %v1258_v6, %v2873_v11  ;;  %v1400_v5 = vadd.f32 %v1061_v47, %v1060_v39  ;;  %v3175_v6 = vld [vmem:[#allocation2] sm:$0xff]  ;;  %2338 = vtanh.f32 %v555_v48  ;;  %v1067_v39 = vmul.f32 %v2329_v13, %v2645_v27  ;;  %v248_v47 = vld [vmem:[#allocation5 + $0x5d8] sm:$0xff] }
  0xf9   :  { %v1264_v9 = vpop.xlane.xlu2 %1263  ;;  %2340 = vtanh.f32 %v556_v12  ;;  %v565_v12 = vadd.f32 %v3086_v23, %v251_v53 }
  0xfa   :  { %v1762_v44 = vsel %vm3542_vm1, %v1761_v31, %v1760_v3  ;;  %v1765_v45 = vperm.slane %v1264_v9, %v2902_v42  ;;  %1395 = vadd.xlane.f32.xlu1 %v1394_v20  ;;  %v246_v3 = vld [vmem:[#allocation5 + $0x5c8] sm:$0xff]  ;;  %vm3540_vm1 = vcmask 1046534   ;;  %v2331_v38 = vpop.eup %2330  ;;  %v1068_v31 = vmul.f32 %v2323_v59, %v2642_v24 }
  0xfb   :  { %v1764_v52 = vsel %vm1681_vm8, %v1763_v61, %v1762_v44  ;;  %v560_v0 = vadd.f32 %v3090_v32, %v246_v3  ;;  %v249_v61 = vld [vmem:[#allocation5 + $0x5e0] sm:$0xff]  ;;  %v2333_v9 = vpop.eup %2332  ;;  %2342 = vtanh.f32 %v559_v1  ;;  %v1070_v59 = vmul.f32 %v2331_v38, %v2642_v24 }
  0xfc   :  { %v1766_v40 = vsel %vm1685_vm9, %v1765_v45, %v1764_v52  ;;  %1392 = vadd.xlane.f32.xlu0 %v1391_v36  ;;  %v338_v36 = vsel %vm3540_vm1, %v3175_v6, %v2627_v2  ;;  %v563_v45 = vadd.f32 %v3086_v23, %v249_v61  ;;  %v564_v52 = vadd.f32 %v3090_v32, %v250_v34  ;;  %v2335_v54 = vpop.eup %2334 }
  0xfd   :  { %v1270_v60 = vpop.xlane.xlu1 %1269  ;;  %v339_v50 = vrot.slane %v338_v36, 6  ;;  %2344 = vtanh.f32 %v560_v0  ;;  %v1409_v48 = vadd.f32 %v1067_v39, %v1066_v41  ;;  %v562_v3 = vadd.f32 %v3090_v32, %v248_v47 }
  0xfe   :  { %1398 = vadd.xlane.f32.xlu2 %v1397_v25  ;;  %v1769_v14 = vperm.slane %v1270_v60, %v2906_v46  ;;  %v1069_v25 = vmul.f32 %v2325_v8, %v2645_v27  ;;  %v2337_v8 = vpop.eup %2336  ;;  %2346 = vtanh.f32 %v563_v45  ;;  %v566_v1 = vadd.f32 %v3090_v32, %v252_v58  ;;  %v253_v32 = vld [vmem:[#allocation5 + $0x600] sm:$0xff] }
  0xff   :  { %v1267_v15 = vpop.xlane.xlu0 %1266  ;;  %v2339_v62 = vpop.eup %2338  ;;  %v3196_v13 = vperm.slane %v339_v50, 0  ;;  %2348 = vtanh.f32 %v564_v52  ;;  %v1074_v38 = vmul.f32 %v2335_v54, %v2642_v24  ;;  %v1075_v41 = vmul.f32 %v2337_v8, %v2645_v27  ;;  %v257_v45 = vld [vmem:[#allocation5 + $0x620] sm:$0xff]  ;;  %v258_v54 = vld [vmem:[#allocation5 + $0x628] sm:$0xff] }
 0x100   :  { %v1767_v20 = vperm.slane %v1267_v15, %v2898_v7  ;;  %v1412_v60 = vadd.f32 %v1069_v25, %v1068_v31  ;;  %2350 = vtanh.f32 %v561_v57  ;;  %vm3543_vm1 = vcmask 1042434  }
 0x101   :  { %v1273_v28 = vpop.xlane.xlu2 %1272  ;;  %2352 = vtanh.f32 %v562_v3  ;;  %v567_v53 = vadd.f32 %v3196_v13, %v253_v32 }
 0x102   :  { %v1768_v35 = vsel %vm1689_vm10, %v1767_v20, %v1766_v40  ;;  %v1771_v37 = vperm.slane %v1273_v28, %v2916_v63  ;;  %1404 = vadd.xlane.f32.xlu1 %v1403_v4  ;;  %v1071_v40 = vmul.f32 %v2333_v9, %v2645_v27  ;;  %v3200_v20 = vperm.slane %v339_v50, 1  ;;  %v256_v28 = vld [vmem:[#allocation5 + $0x618] sm:$0xff] }
 0x103   :  { %v1770_v44 = vsel %vm1693_vm11, %v1769_v14, %v1768_v35  ;;  %v2341_v14 = vpop.eup %2340  ;;  %v1072_v9 = vmul.f32 %v2339_v62, %v2642_v24  ;;  %2354 = vtanh.f32 %v565_v12 }
 0x104   :  { %v1772_v51 = vsel %vm1697_vm13, %v1771_v37, %v1770_v44  ;;  %1401 = vadd.xlane.f32.xlu0 %v1400_v5  ;;  %v2343_v0 = vpop.eup %2342  ;;  %v1415_v36 = vadd.f32 %v1071_v40, %v1070_v59  ;;  %v254_v37 = vld [vmem:[#allocation5 + $0x608] sm:$0xff]  ;;  %v1073_v43 = vmul.f32 %v2341_v14, %v2645_v27  ;;  %2356 = vtanh.f32 %v566_v1 }
 0x105   :  { %v1279_v55 = vpop.xlane.xlu1 %1278  ;;  %v2345_v31 = vpop.eup %2344  ;;  %v570_v44 = vadd.f32 %v3200_v20, %v256_v28  ;;  %v1421_v59 = vadd.f32 %v1075_v41, %v1074_v38  ;;  %v568_v40 = vadd.f32 %v3200_v20, %v254_v37  ;;  %v259_v28 = vld [vmem:[#allocation5 + $0x630] sm:$0xff]  ;;  %v260_v41 = vld [vmem:[#allocation5 + $0x638] sm:$0xff] }
 0x106   :  { %1407 = vadd.xlane.f32.xlu2 %v1406_v16  ;;  %v1775_v4 = vperm.slane %v1279_v55, %v2936_v29  ;;  %v255_v16 = vld [vmem:[#allocation5 + $0x610] sm:$0xff]  ;;  %v2347_v47 = vpop.eup %2346  ;;  %v1077_v52 = vmul.f32 %v2345_v31, %v2645_v27  ;;  %v1418_v62 = vadd.f32 %v1073_v43, %v1072_v9 }
 0x107   :  { %v1276_v5 = vpop.xlane.xlu0 %1275  ;;  %v569_v35 = vadd.f32 %v3196_v13, %v255_v16  ;;  %v2349_v55 = vpop.eup %2348  ;;  %v1080_v1 = vmul.f32 %v2347_v47, %v2642_v24  ;;  %v262_v16 = vld [vmem:[#allocation5 + $0x648] sm:$0xff]  ;;  %v573_v47 = vadd.f32 %v3196_v13, %v259_v28 }
 0x108   :  { %v1773_v15 = vperm.slane %v1276_v5, %v2913_v56  ;;  %v2351_v57 = vpop.eup %2350  ;;  %v261_v5 = vld [vmem:[#allocation5 + $0x640] sm:$0xff]  ;;  %v1081_v38 = vmul.f32 %v2349_v55, %v2645_v27  ;;  %v576_v9 = vadd.f32 %v3200_v20, %v262_v16 }
 0x109   :  { %v1282_v61 = vpop.xlane.xlu2 %1281  ;;  %2358 = vtanh.f32 %v569_v35  ;;  %v263_v35 = vld [vmem:[#allocation5 + $0x650] sm:$0xff]  ;;  %v265_v16 = vld [vmem:[#allocation5 + $0x660] sm:$0xff] }
 0x10a   :  { %v1774_v23 = vsel %vm1701_vm14, %v1773_v15, %v1772_v51  ;;  %v1777_v25 = vperm.slane %v1282_v61, %v2968_v33  ;;  %1413 = vadd.xlane.f32.xlu1 %v1412_v60  ;;  %v1076_v51 = vmul.f32 %v2343_v0, %v2642_v24  ;;  %v571_v60 = vadd.f32 %v3196_v13, %v257_v45 }
 0x10b   :  { %v1776_v34 = vsel %vm1705_vm15, %v1775_v4, %v1774_v23  ;;  %2360 = vtanh.f32 %v570_v44  ;;  %v572_v4 = vadd.f32 %v3200_v20, %v258_v54  ;;  %v1078_v23 = vmul.f32 %v2351_v57, %v2642_v24 }
 0x10c   :  { %v1778_v39 = vsel %vm1709_vm0, %v1777_v25, %v1776_v34  ;;  %1410 = vadd.xlane.f32.xlu0 %v1409_v48  ;;  %v2353_v48 = vpop.eup %2352  ;;  %v1424_v15 = vadd.f32 %v1077_v52, %v1076_v51  ;;  %2362 = vtanh.f32 %v567_v53  ;;  %v575_v25 = vadd.f32 %v3196_v13, %v261_v5  ;;  %v268_v5 = vld [vmem:[#allocation5 + $0x678] sm:$0xff] }
 0x10d   :  { %v1288_v50 = vpop.xlane.xlu1 %1287  ;;  %v2355_v12 = vpop.eup %2354  ;;  %2364 = vtanh.f32 %v568_v40  ;;  %v1079_v34 = vmul.f32 %v2353_v48, %v2645_v27  ;;  %v1430_v53 = vadd.f32 %v1081_v38, %v1080_v1  ;;  %v574_v54 = vadd.f32 %v3200_v20, %v260_v41  ;;  %v266_v38 = vld [vmem:[#allocation5 + $0x668] sm:$0xff] }
 0x10e   :  { %1416 = vadd.xlane.f32.xlu2 %v1415_v36  ;;  %v1781_v58 = vperm.slane %v1288_v50, %v2992_v21  ;;  %v2357_v0 = vpop.eup %2356  ;;  %2366 = vtanh.f32 %v571_v60  ;;  %v1082_v44 = vmul.f32 %v2355_v12, %v2642_v24  ;;  %v264_v50 = vld [vmem:[#allocation5 + $0x658] sm:$0xff]  ;;  %v267_v60 = vld [vmem:[#allocation5 + $0x670] sm:$0xff] }
 0x10f   :  { %v1285_v8 = vpop.xlane.xlu0 %1284  ;;  %2368 = vtanh.f32 %v572_v4  ;;  %v2359_v37 = vpop.eup %2358  ;;  %v1083_v45 = vmul.f32 %v2357_v0, %v2645_v27 }
 0x110   :  { %v1779_v3 = vperm.slane %v1285_v8, %v2964_v26  ;;  %2370 = vtanh.f32 %v575_v25  ;;  %v578_v8 = vadd.f32 %v3200_v20, %v264_v50  ;;  %v1086_v4 = vmul.f32 %v2359_v37, %v2642_v24 }
 0x111   :  { %v1291_v14 = vpop.xlane.xlu2 %1290  ;;  %v2361_v51 = vpop.eup %2360  ;;  %2372 = vtanh.f32 %v576_v9  ;;  %v579_v9 = vadd.f32 %v3196_v13, %v265_v16  ;;  %v272_v16 = vld [vmem:[#allocation5 + $0x698] sm:$0xff] }
 0x112   :  { %v1780_v61 = vsel %vm1713_vm12, %v1779_v3, %v1778_v39  ;;  %v1783_v36 = vperm.slane %v1291_v14, %v2996_v22  ;;  %1422 = vadd.xlane.f32.xlu1 %v1421_v59  ;;  %v2363_v55 = vpop.eup %2362  ;;  %2374 = vtanh.f32 %v573_v47  ;;  %v1087_v1 = vmul.f32 %v2361_v51, %v2645_v27 }
 0x113   :  { %v1782_v31 = vsel %vm1717_vm3, %v1781_v58, %v1780_v61  ;;  %v2365_v40 = vpop.eup %2364  ;;  %v1427_v58 = vadd.f32 %v1079_v34, %v1078_v23  ;;  %2376 = vtanh.f32 %v574_v54  ;;  %v1084_v0 = vmul.f32 %v2363_v55, %v2642_v24  ;;  %v269_v23 = vld [vmem:[#allocation5 + $0x680] sm:$0xff] }
 0x114   :  { %v1784_v32 = vsel %vm1721_vm2, %v1783_v36, %v1782_v31  ;;  %1419 = vadd.xlane.f32.xlu0 %v1418_v62  ;;  %v2367_v48 = vpop.eup %2366  ;;  %v1433_v62 = vadd.f32 %v1083_v45, %v1082_v44  ;;  %v1085_v61 = vmul.f32 %v2365_v40, %v2645_v27  ;;  %v581_v36 = vadd.f32 %v3196_v13, %v267_v60  ;;  %v274_v60 = vld [vmem:[#allocation5 + $0x6a8] sm:$0xff] }
 0x115   :  { %v3232_v39 = vsel %vm3543_vm1, %v1784_v32, %v3130_v19  ;;  %v1297_v43 = vpop.xlane.xlu1 %1296  ;;  %v577_v19 = vadd.f32 %v3196_v13, %v263_v35  ;;  %v2369_v12 = vpop.eup %2368  ;;  %v582_v31 = vadd.f32 %v3200_v20, %v268_v5  ;;  %v1088_v32 = vmul.f32 %v2367_v48, %v2642_v24  ;;  %v270_v35 = vld [vmem:[#allocation5 + $0x688] sm:$0xff] }
 0x116   :  { %1425 = vadd.xlane.f32.xlu2 %v1424_v15  ;;  %v1786_v52 = vperm.slane %v1297_v43, %v2881_v18  ;;  %v2371_v25 = vpop.eup %2370  ;;  %v1089_v34 = vmul.f32 %v2369_v12, %v2645_v27  ;;  %v1439_v43 = vadd.f32 %v1087_v1, %v1086_v4  ;;  %v580_v44 = vadd.f32 %v3200_v20, %v266_v38  ;;  %v271_v12 = vld [vmem:[#allocation5 + $0x690] sm:$0xff] }
 0x117   :  { %v1294_v59 = vpop.xlane.xlu0 %1293  ;;  %2378 = vtanh.f32 %v577_v19  ;;  %v2373_v37 = vpop.eup %2372  ;;  %vm340_vm1 = vcmask 1046528   ;;  %v1436_v51 = vadd.f32 %v1085_v61, %v1084_v0  ;;  %v1092_v55 = vmul.f32 %v2371_v25, %v2642_v24  ;;  %v273_v19 = vld [vmem:[#allocation5 + $0x6a0] sm:$0xff]  ;;  %v275_v0 = vld [vmem:[#allocation5 + $0x6b0] sm:$0xff]  ;;  %v276_v25 = vld [vmem:[#allocation5 + $0x6b8] sm:$0xff] }
 0x118   :  { %v1785_v57 = vperm.slane %v1294_v59, %v2856_v49  ;;  %2380 = vtanh.f32 %v578_v8  ;;  %v2375_v45 = vpop.eup %2374  ;;  %v584_v59 = vadd.f32 %v3200_v20, %v270_v35  ;;  %v1093_v8 = vmul.f32 %v2373_v37, %v2645_v27 }
 0x119   :  { %v1300_v3 = vpop.xlane.xlu2 %1299  ;;  %2382 = vtanh.f32 %v581_v36  ;;  %v341_v48 = vsel %vm340_vm1, %v2627_v2, %v3175_v6  ;;  %v1090_v5 = vmul.f32 %v2375_v45, %v2642_v24  ;;  %v587_v1 = vadd.f32 %v3196_v13, %v273_v19  ;;  %v285_v19 = vld [vmem:[#allocation5 + $0x700] sm:$0xff] }
 0x11a   :  { %v1787_v14 = vsel %vm1665_vm4, %v1786_v52, %v1785_v57  ;;  %v1788_v15 = vperm.slane %v1300_v3, %v2870_v10  ;;  %1431 = vadd.xlane.f32.xlu1 %v1430_v53  ;;  %v583_v52 = vadd.f32 %v3196_v13, %v269_v23  ;;  %v2377_v53 = vpop.eup %2376  ;;  %2384 = vtanh.f32 %v582_v31 }
 0x11b   :  { %2386 = vtanh.f32 %v579_v9  ;;  %v588_v6 = vadd.f32 %v3200_v20, %v274_v60  ;;  %v342_v61 = vrot.slane %v341_v48, 7  ;;  %v585_v23 = vadd.f32 %v3196_v13, %v271_v12  ;;  %v286_v48 = vld [vmem:[#allocation5 + $0x708] sm:$0xff] }
 0x11c   :  { %v1789_v28 = vsel %vm1669_vm5, %v1788_v15, %v1787_v14  ;;  %1428 = vadd.xlane.f32.xlu0 %v1427_v58  ;;  %v1442_v58 = vadd.f32 %v1089_v34, %v1088_v32  ;;  %2388 = vtanh.f32 %v580_v44  ;;  %v1091_v15 = vmul.f32 %v2377_v53, %v2645_v27 }
 0x11d   :  { %v1306_v41 = vpop.xlane.xlu1 %1305  ;;  %v2379_v40 = vpop.eup %2378  ;;  %2390 = vtanh.f32 %v583_v52  ;;  %v1448_v32 = vadd.f32 %v1093_v8, %v1092_v55  ;;  %v586_v34 = vadd.f32 %v3200_v20, %v272_v16  ;;  %v589_v44 = vadd.f32 %v3196_v13, %v275_v0  ;;  %v277_v52 = vld [vmem:[#allocation5 + $0x6c0] sm:$0xff] }
 0x11e   :  { %1434 = vadd.xlane.f32.xlu2 %v1433_v62  ;;  %v1792_v47 = vperm.slane %v1306_v41, %v2873_v11  ;;  %v2381_v3 = vpop.eup %2380  ;;  %2392 = vtanh.f32 %v584_v59  ;;  %vm3546_vm1 = vcmask 326912  }
 0x11f   :  { %v1303_v50 = vpop.xlane.xlu0 %1302  ;;  %v2383_v36 = vpop.eup %2382  ;;  %v1095_v31 = vmul.f32 %v2381_v3, %v2645_v27  ;;  %2394 = vtanh.f32 %v587_v1  ;;  %v287_v1 = vld [vmem:[#allocation5 + $0x710] sm:$0xff] }
 0x120   :  { %v1790_v54 = vperm.slane %v1303_v50, %v2878_v17  ;;  %v2385_v41 = vpop.eup %2384  ;;  %2396 = vtanh.f32 %v588_v6  ;;  %v590_v50 = vadd.f32 %v3200_v20, %v276_v25  ;;  %v1098_v59 = vmul.f32 %v2383_v36, %v2642_v24  ;;  %v288_v36 = vld [vmem:[#allocation5 + $0x718] sm:$0xff] }
 0x121   :  { %v1309_v57 = vpop.xlane.xlu2 %1308  ;;  %v2387_v9 = vpop.eup %2386  ;;  %2398 = vtanh.f32 %v585_v23  ;;  %v1099_v60 = vmul.f32 %v2385_v41, %v2645_v27 }
 0x122   :  { %v1791_v62 = vsel %vm1673_vm6, %v1790_v54, %v1789_v28  ;;  %v1794_v4 = vperm.slane %v1309_v57, %v2890_v30  ;;  %1440 = vadd.xlane.f32.xlu1 %v1439_v43  ;;  %v1094_v28 = vmul.f32 %v2379_v40, %v2642_v24  ;;  %v1445_v43 = vadd.f32 %v1091_v15, %v1090_v5  ;;  %v2389_v45 = vpop.eup %2388 }
 0x123   :  { %v1793_v14 = vsel %vm3544_vm7, %v1792_v47, %v1791_v62  ;;  %v2391_v53 = vpop.eup %2390  ;;  %v3283_v40 = vperm.slane %v342_v61, 1  ;;  %2400 = vtanh.f32 %v586_v34  ;;  %v1096_v62 = vmul.f32 %v2387_v9, %v2642_v24 }
 0x124   :  { %v1795_v2 = vsel %vm1681_vm8, %v1794_v4, %v1793_v14  ;;  %1437 = vadd.xlane.f32.xlu0 %v1436_v51  ;;  %v3280_v51 = vperm.slane %v342_v61, 0  ;;  %v1451_v55 = vadd.f32 %v1095_v31, %v1094_v28  ;;  %v2393_v57 = vpop.eup %2392  ;;  %2402 = vtanh.f32 %v589_v44  ;;  %v278_v4 = vld [vmem:[#allocation5 + $0x6c8] sm:$0xff] }
 0x125   :  { %v1315_v38 = vpop.xlane.xlu1 %1314  ;;  %v591_v5 = vadd.f32 %v3196_v13, %v277_v52  ;;  %v1097_v14 = vmul.f32 %v2389_v45, %v2645_v27  ;;  %2404 = vtanh.f32 %v590_v50  ;;  %v2395_v16 = vpop.eup %2394  ;;  %v1100_v6 = vmul.f32 %v2391_v53, %v2642_v24  ;;  %v292_v52 = vld [vmem:[#allocation5 + $0x738] sm:$0xff] }
 0x126   :  { %1443 = vadd.xlane.f32.xlu2 %v1442_v58  ;;  %v1798_v35 = vperm.slane %v1315_v38, %v2898_v7  ;;  %v599_v15 = vadd.f32 %v3280_v51, %v285_v19  ;;  %v1101_v0 = vmul.f32 %v2393_v57, %v2645_v27  ;;  %v600_v61 = vadd.f32 %v3283_v40, %v286_v48  ;;  %v2397_v38 = vpop.eup %2396  ;;  %v289_v19 = vld [vmem:[#allocation5 + $0x720] sm:$0xff] }
 0x127   :  { %v1312_v37 = vpop.xlane.xlu0 %1311  ;;  %v1457_v28 = vadd.f32 %v1099_v60, %v1098_v59  ;;  %v592_v31 = vadd.f32 %v3200_v20, %v278_v4  ;;  %v2399_v23 = vpop.eup %2398  ;;  %2406 = vtanh.f32 %v591_v5  ;;  %v1104_v50 = vmul.f32 %v2395_v16, %v2642_v24  ;;  %v290_v60 = vld [vmem:[#allocation5 + $0x728] sm:$0xff]  ;;  %v293_v4 = vld [vmem:[#allocation5 + $0x740] sm:$0xff] }
 0x128   :  { %v1796_v47 = vperm.slane %v1312_v37, %v2902_v42  ;;  %2408 = vtanh.f32 %v599_v15  ;;  %v602_v37 = vadd.f32 %v3283_v40, %v288_v36  ;;  %v1105_v59 = vmul.f32 %v2397_v38, %v2645_v27  ;;  %v294_v16 = vld [vmem:[#allocation5 + $0x748] sm:$0xff] }
 0x129   :  { %v1318_v54 = vpop.xlane.xlu2 %1317  ;;  %v2401_v34 = vpop.eup %2400  ;;  %2410 = vtanh.f32 %v600_v61  ;;  %vm3545_vm7 = vcmask 1043459  }
 0x12a   :  { %v1797_v58 = vsel %vm1685_vm9, %v1796_v47, %v1795_v2  ;;  %v1800_v8 = vperm.slane %v1318_v54, %v2906_v46  ;;  %1449 = vadd.xlane.f32.xlu1 %v1448_v32  ;;  %v601_v32 = vadd.f32 %v3280_v51, %v287_v1  ;;  %v2403_v44 = vpop.eup %2402  ;;  %v1460_v47 = vadd.f32 %v1101_v0, %v1100_v6 }
 0x12b   :  { %v1799_v3 = vsel %vm1689_vm10, %v1798_v35, %v1797_v58  ;;  %v1454_v35 = vadd.f32 %v1097_v14, %v1096_v62  ;;  %v2405_v53 = vpop.eup %2404  ;;  %2412 = vtanh.f32 %v592_v31  ;;  %v1102_v58 = vmul.f32 %v2399_v23, %v2642_v24 }
 0x12c   :  { %v1801_v12 = vsel %vm1693_vm11, %v1800_v8, %v1799_v3  ;;  %1446 = vadd.xlane.f32.xlu0 %v1445_v43  ;;  %v291_v43 = vld [vmem:[#allocation5 + $0x730] sm:$0xff]  ;;  %2414 = vtanh.f32 %v601_v32  ;;  %v1103_v3 = vmul.f32 %v2401_v34, %v2645_v27  ;;  %v606_v62 = vadd.f32 %v3283_v40, %v292_v52  ;;  %v297_v32 = vld [vmem:[#allocation5 + $0x760] sm:$0xff] }
 0x12d   :  { %v1324_v2 = vpop.xlane.xlu1 %1323  ;;  %v605_v8 = vadd.f32 %v3280_v51, %v291_v43  ;;  %2416 = vtanh.f32 %v602_v37  ;;  %v2407_v5 = vpop.eup %2406  ;;  %v1106_v14 = vmul.f32 %v2403_v44, %v2642_v24  ;;  %v1107_v15 = vmul.f32 %v2405_v53, %v2645_v27  ;;  %v298_v44 = vld [vmem:[#allocation5 + $0x768] sm:$0xff]  ;;  %v295_v53 = vld [vmem:[#allocation5 + $0x750] sm:$0xff] }
 0x12e   :  { %1452 = vadd.xlane.f32.xlu2 %v1451_v55  ;;  %v1804_v25 = vperm.slane %v1324_v2, %v2913_v56  ;;  %v603_v1 = vadd.f32 %v3280_v51, %v289_v19  ;;  %v2409_v2 = vpop.eup %2408  ;;  %v1466_v6 = vadd.f32 %v1105_v59, %v1104_v50  ;;  %v604_v0 = vadd.f32 %v3283_v40, %v290_v60  ;;  %v296_v19 = vld [vmem:[#allocation5 + $0x758] sm:$0xff] }
 0x12f   :  { %v1321_v41 = vpop.xlane.xlu0 %1320  ;;  %v2411_v61 = vpop.eup %2410  ;;  %2418 = vtanh.f32 %v605_v8  ;;  %v1116_v37 = vmul.f32 %v2409_v2, %v2642_v24  ;;  %v1108_v43 = vmul.f32 %v2407_v5, %v2642_v24  ;;  %v611_v59 = vadd.f32 %v3280_v51, %v297_v32  ;;  %v299_v8 = vld [vmem:[#allocation5 + $0x770] sm:$0xff]  ;;  %v300_v5 = vld [vmem:[#allocation5 + $0x778] sm:$0xff] }
 0x130   :  { %v1802_v9 = vperm.slane %v1321_v41, %v2916_v63  ;;  %2420 = vtanh.f32 %v606_v62  ;;  %v608_v41 = vadd.f32 %v3283_v40, %v294_v16  ;;  %v1117_v52 = vmul.f32 %v2411_v61, %v2645_v27  ;;  %v304_v32 = vld [vmem:[#allocation5 + $0x798] sm:$0xff] }
 0x131   :  { %v1327_v45 = vpop.xlane.xlu2 %1326  ;;  %v2413_v31 = vpop.eup %2412  ;;  %2422 = vtanh.f32 %v603_v1 }
 0x132   :  { %v1803_v54 = vsel %vm1697_vm13, %v1802_v9, %v1801_v12  ;;  %v1806_v55 = vperm.slane %v1327_v45, %v2936_v29  ;;  %1458 = vadd.xlane.f32.xlu1 %v1457_v28  ;;  %v607_v28 = vadd.f32 %v3280_v51, %v293_v4  ;;  %v2415_v34 = vpop.eup %2414  ;;  %2424 = vtanh.f32 %v604_v0 }
 0x133   :  { %v1805_v57 = vsel %vm1701_vm14, %v1804_v25, %v1803_v54  ;;  %v1463_v25 = vadd.f32 %v1103_v3, %v1102_v58  ;;  %v2417_v45 = vpop.eup %2416  ;;  %v612_v58 = vadd.f32 %v3283_v40, %v298_v44  ;;  %v1118_v3 = vmul.f32 %v2415_v34, %v2642_v24 }
 0x134   :  { %v1807_v48 = vsel %vm1705_vm15, %v1806_v55, %v1805_v57  ;;  %1455 = vadd.xlane.f32.xlu0 %v1454_v35  ;;  %v1469_v35 = vadd.f32 %v1107_v15, %v1106_v14  ;;  %v1109_v55 = vmul.f32 %v2413_v31, %v2645_v27  ;;  %2426 = vtanh.f32 %v607_v28  ;;  %v303_v28 = vld [vmem:[#allocation5 + $0x790] sm:$0xff] }
 0x135   :  { %v1333_v12 = vpop.xlane.xlu1 %1332  ;;  %2428 = vtanh.f32 %v608_v41  ;;  %v2419_v60 = vpop.eup %2418  ;;  %v1119_v62 = vmul.f32 %v2417_v45, %v2645_v27  ;;  %v609_v4 = vadd.f32 %v3280_v51, %v295_v53  ;;  %v1484_v14 = vadd.f32 %v1117_v52, %v1116_v37 }
 0x136   :  { %1461 = vadd.xlane.f32.xlu2 %v1460_v47  ;;  %v1810_v36 = vperm.slane %v1333_v12, %v2964_v26  ;;  %v2421_v12 = vpop.eup %2420  ;;  %v610_v15 = vadd.f32 %v3283_v40, %v296_v19  ;;  %v1472_v2 = vadd.f32 %v1109_v55, %v1108_v43  ;;  %2430 = vtanh.f32 %v611_v59  ;;  %v301_v43 = vld [vmem:[#allocation5 + $0x780] sm:$0xff] }
 0x137   :  { %v1330_v38 = vpop.xlane.xlu0 %1329  ;;  %v2423_v1 = vpop.eup %2422  ;;  %2432 = vtanh.f32 %v612_v58  ;;  %v1122_v41 = vmul.f32 %v2419_v60, %v2642_v24  ;;  %v1123_v37 = vmul.f32 %v2421_v12, %v2645_v27  ;;  %v305_v55 = vld [vmem:[#allocation5 + $0x7a0] sm:$0xff]  ;;  %v615_v58 = vadd.f32 %v3280_v51, %v301_v43 }
 0x138   :  { %v1808_v23 = vperm.slane %v1330_v38, %v2968_v33  ;;  %v2425_v0 = vpop.eup %2424  ;;  %v614_v38 = vadd.f32 %v3283_v40, %v300_v5  ;;  %2434 = vtanh.f32 %v609_v4  ;;  %v1120_v45 = vmul.f32 %v2423_v1, %v2642_v24 }
 0x139   :  { %v1336_v9 = vpop.xlane.xlu2 %1335  ;;  %2436 = vtanh.f32 %v610_v15  ;;  %v1121_v53 = vmul.f32 %v2425_v0, %v2645_v27  ;;  %v619_v12 = vadd.f32 %v3280_v51, %v305_v55 }
 0x13a   :  { %v1809_v47 = vsel %vm1709_vm0, %v1808_v23, %v1807_v48  ;;  %v1812_v50 = vperm.slane %v1336_v9, %v2992_v21  ;;  %1467 = vadd.xlane.f32.xlu1 %v1466_v6  ;;  %v613_v6 = vadd.f32 %v3280_v51, %v299_v8  ;;  %v2427_v31 = vpop.eup %2426  ;;  %v306_v8 = vld [vmem:[#allocation5 + $0x7a8] sm:$0xff] }
 0x13b   :  { %v1811_v54 = vsel %vm1713_vm12, %v1810_v36, %v1809_v47  ;;  %v2429_v34 = vpop.eup %2428  ;;  %v617_v47 = vadd.f32 %v3280_v51, %v303_v28  ;;  %v1490_v1 = vadd.f32 %v1121_v53, %v1120_v45 }
 0x13c   :  { %v1813_v57 = vsel %vm1717_vm3, %v1812_v50, %v1811_v54  ;;  %1464 = vadd.xlane.f32.xlu0 %v1463_v25  ;;  %v1487_v25 = vadd.f32 %v1119_v62, %v1118_v3  ;;  %2438 = vtanh.f32 %v613_v6  ;;  %v302_v50 = vld [vmem:[#allocation5 + $0x788] sm:$0xff]  ;;  %v618_v54 = vadd.f32 %v3283_v40, %v304_v32  ;;  %v2431_v59 = vpop.eup %2430 }
 0x13d   :  { %v1342_v48 = vpop.xlane.xlu1 %1341  ;;  %2440 = vtanh.f32 %v614_v38  ;;  %v2433_v60 = vpop.eup %2432  ;;  %v616_v3 = vadd.f32 %v3283_v40, %v302_v50  ;;  %v280_v38 = vld [vmem:[#allocation5 + $0x6d8] sm:$0xff] }
 0x13e   :  { %1470 = vadd.xlane.f32.xlu2 %v1469_v35  ;;  %v1816_v61 = vperm.slane %v1342_v48, %v2856_v49  ;;  %v1493_v48 = vadd.f32 %v1123_v37, %v1122_v41  ;;  %v2435_v62 = vpop.eup %2434  ;;  %2442 = vtanh.f32 %v617_v47  ;;  %v307_v41 = vld [vmem:[#allocation5 + $0x7b0] sm:$0xff]  ;;  %v594_v45 = vadd.f32 %v3200_v20, %v280_v38  ;;  %v309_v47 = vld [vmem:[#allocation5 + $0x7c0] sm:$0xff] }
 0x13f   :  { %v1339_v16 = vpop.xlane.xlu0 %1338  ;;  %2444 = vtanh.f32 %v618_v54  ;;  %v621_v55 = vadd.f32 %v3280_v51, %v307_v41 }
 0x140   :  { %v1814_v36 = vperm.slane %v1339_v16, %v2996_v22  ;;  %v620_v16 = vadd.f32 %v3283_v40, %v306_v8  ;;  %2446 = vtanh.f32 %v615_v58 }
 0x141   :  { %v1345_v23 = vpop.xlane.xlu2 %1344  ;;  %2448 = vtanh.f32 %v616_v3 }
 0x142   :  { %v1815_v9 = vsel %vm1721_vm2, %v1814_v36, %v1813_v57  ;;  %v1817_v35 = vperm.slane %v1345_v23, %v2881_v18  ;;  %1485 = vadd.xlane.f32.xlu1 %v1484_v14  ;;  %v1125_v57 = vmul.f32 %v2429_v34, %v2645_v27  ;;  %v2437_v14 = vpop.eup %2436  ;;  %v1128_v36 = vmul.f32 %v2431_v59, %v2642_v24  ;;  %v310_v59 = vld [vmem:[#allocation5 + $0x7c8] sm:$0xff] }
 0x143   :  { %v3344_v44 = vsel %vm3545_vm7, %v1815_v9, %v3232_v39  ;;  %v1124_v39 = vmul.f32 %v2427_v31, %v2642_v24  ;;  %v2439_v6 = vpop.eup %2438  ;;  %v1126_v34 = vmul.f32 %v2435_v62, %v2642_v24  ;;  %2450 = vtanh.f32 %v619_v12 }
 0x144   :  { %v1818_v52 = vsel %vm1665_vm4, %v1817_v35, %v1816_v61  ;;  %1473 = vadd.xlane.f32.xlu0 %v1472_v2  ;;  %v279_v2 = vld [vmem:[#allocation5 + $0x6d0] sm:$0xff]  ;;  %v2441_v28 = vpop.eup %2440  ;;  %v308_v35 = vld [vmem:[#allocation5 + $0x7b8] sm:$0xff]  ;;  %v1127_v43 = vmul.f32 %v2437_v14, %v2645_v27  ;;  %2452 = vtanh.f32 %v620_v16  ;;  %v1130_v53 = vmul.f32 %v2439_v6, %v2642_v24 }
 0x145   :  { %v1351_v19 = vpop.xlane.xlu1 %1350  ;;  %v1496_v61 = vadd.f32 %v1125_v57, %v1124_v39  ;;  %v593_v9 = vadd.f32 %v3196_v13, %v279_v2  ;;  %v2443_v50 = vpop.eup %2442  ;;  %v1131_v54 = vmul.f32 %v2441_v28, %v2645_v27  ;;  %v622_v57 = vadd.f32 %v3283_v40, %v308_v35  ;;  %v311_v16 = vld [vmem:[#allocation5 + $0x7d0] sm:$0xff] }
 0x146   :  { %1488 = vadd.xlane.f32.xlu2 %v1487_v25  ;;  %v1821_v4 = vperm.slane %v1351_v19, %v2878_v17  ;;  %v1129_v25 = vmul.f32 %v2433_v60, %v2645_v27  ;;  %v2445_v19 = vpop.eup %2444  ;;  %v625_v41 = vadd.f32 %v3280_v51, %v311_v16  ;;  %v316_v16 = vld [vmem:[#allocation5 + $0x7f8] sm:$0xff]  ;;  %vm3547_vm7 = vcmask 1044484  }
 0x147   :  { %v1348_v5 = vpop.xlane.xlu0 %1347  ;;  %v2447_v58 = vpop.eup %2446  ;;  %2454 = vtanh.f32 %v593_v9 }
 0x148   :  { %v1819_v15 = vperm.slane %v1348_v5, %v2870_v10  ;;  %v1502_v39 = vadd.f32 %v1129_v25, %v1128_v36  ;;  %v2449_v3 = vpop.eup %2448  ;;  %2456 = vtanh.f32 %v594_v45  ;;  %v624_v5 = vadd.f32 %v3283_v40, %v310_v59  ;;  %v312_v36 = vld [vmem:[#allocation5 + $0x7d8] sm:$0xff]  ;;  %v283_v45 = vld [vmem:[#allocation5 + $0x6f0] sm:$0xff] }
 0x149   :  { %v1354_v0 = vpop.xlane.xlu2 %1353  ;;  %v2451_v12 = vpop.eup %2450  ;;  %2458 = vtanh.f32 %v621_v55  ;;  %v1132_v28 = vmul.f32 %v2447_v58, %v2642_v24  ;;  %v1133_v25 = vmul.f32 %v2449_v3, %v2645_v27 }
 0x14a   :  { %v1820_v31 = vsel %vm1669_vm5, %v1819_v15, %v1818_v52  ;;  %v1823_v23 = vperm.slane %v1354_v0, %v2873_v11  ;;  %1494 = vadd.xlane.f32.xlu1 %v1493_v48  ;;  %v623_v48 = vadd.f32 %v3280_v51, %v309_v47  ;;  %v1505_v15 = vadd.f32 %v1131_v54, %v1130_v53  ;;  %v2453_v2 = vpop.eup %2452  ;;  %v284_v53 = vld [vmem:[#allocation5 + $0x6f8] sm:$0xff] }
 0x14b   :  { %v1822_v32 = vsel %vm1673_vm6, %v1821_v4, %v1820_v31  ;;  %v1499_v4 = vadd.f32 %v1127_v43, %v1126_v34  ;;  %2460 = vtanh.f32 %v622_v57  ;;  %v281_v31 = vld [vmem:[#allocation5 + $0x6e0] sm:$0xff]  ;;  %v1136_v35 = vmul.f32 %v2451_v12, %v2642_v24 }
 0x14c   :  { %v1824_v37 = vsel %vm3546_vm1, %v1823_v23, %v1822_v32  ;;  %1491 = vadd.xlane.f32.xlu0 %v1490_v1  ;;  %v1134_v1 = vmul.f32 %v2443_v50, %v2642_v24  ;;  %2462 = vtanh.f32 %v623_v48  ;;  %v282_v32 = vld [vmem:[#allocation5 + $0x6e8] sm:$0xff]  ;;  %v626_v43 = vadd.f32 %v3283_v40, %v312_v36 }
 0x14d   :  { %v1360_v52 = vpop.xlane.xlu1 %1359  ;;  %2464 = vtanh.f32 %v624_v5  ;;  %v2455_v34 = vpop.eup %2454  ;;  %v1508_v58 = vadd.f32 %v1133_v25, %v1132_v28  ;;  %v315_v5 = vld [vmem:[#allocation5 + $0x7f0] sm:$0xff] }
 0x14e   :  { %1497 = vadd.xlane.f32.xlu2 %v1496_v61  ;;  %v1827_v8 = vperm.slane %v1360_v52, %v2902_v42  ;;  %v1135_v61 = vmul.f32 %v2445_v19, %v2645_v27  ;;  %v2457_v47 = vpop.eup %2456  ;;  %v595_v52 = vadd.f32 %v3196_v13, %v281_v31  ;;  %v596_v19 = vadd.f32 %v3200_v20, %v282_v32 }
 0x14f   :  { %v1357_v60 = vpop.xlane.xlu0 %1356  ;;  %v2459_v54 = vpop.eup %2458  ;;  %2466 = vtanh.f32 %v625_v41  ;;  %v629_v36 = vadd.f32 %v3280_v51, %v315_v5 }
 0x150   :  { %v1825_v62 = vperm.slane %v1357_v60, %v2890_v30  ;;  %v1511_v50 = vadd.f32 %v1135_v61, %v1134_v1  ;;  %2468 = vtanh.f32 %v626_v43  ;;  %v1111_v1 = vmul.f32 %v2457_v47, %v2645_v27  ;;  %v314_v61 = vld [vmem:[#allocation5 + $0x7e8] sm:$0xff] }
 0x151   :  { %v1363_v14 = vpop.xlane.xlu2 %1362  ;;  %2470 = vtanh.f32 %v595_v52 }
 0x152   :  { %v1826_v6 = vsel %vm1681_vm8, %v1825_v62, %v1824_v37  ;;  %v1829_v0 = vperm.slane %v1363_v14, %v2898_v7  ;;  %1503 = vadd.xlane.f32.xlu1 %v1502_v39  ;;  %v1137_v37 = vmul.f32 %v2453_v2, %v2645_v27  ;;  %v2461_v39 = vpop.eup %2460  ;;  %v1110_v62 = vmul.f32 %v2455_v34, %v2642_v24 }
 0x153   :  { %v1828_v38 = vsel %vm1685_vm9, %v1827_v8, %v1826_v6  ;;  %v597_v8 = vadd.f32 %v3196_v13, %v283_v45  ;;  %v2463_v60 = vpop.eup %2462  ;;  %v1138_v2 = vmul.f32 %v2459_v54, %v2642_v24  ;;  %2472 = vtanh.f32 %v596_v19  ;;  %v313_v6 = vld [vmem:[#allocation5 + $0x7e0] sm:$0xff] }
 0x154   :  { %v1830_v23 = vsel %vm1689_vm10, %v1829_v0, %v1828_v38  ;;  %1500 = vadd.xlane.f32.xlu0 %v1499_v4  ;;  %v1514_v3 = vadd.f32 %v1137_v37, %v1136_v35  ;;  %v598_v4 = vadd.f32 %v3200_v20, %v284_v53  ;;  %v2465_v12 = vpop.eup %2464  ;;  %v1139_v20 = vmul.f32 %v2461_v39, %v2645_v27 }
 0x155   :  { %v1369_v9 = vpop.xlane.xlu1 %1368  ;;  %2474 = vtanh.f32 %v597_v8  ;;  %v1140_v28 = vmul.f32 %v2463_v60, %v2642_v24  ;;  %v1141_v31 = vmul.f32 %v2465_v12, %v2645_v27  ;;  %v2467_v25 = vpop.eup %2466  ;;  %v1475_v41 = vadd.f32 %v1111_v1, %v1110_v62 }
 0x156   :  { %1506 = vadd.xlane.f32.xlu2 %v1505_v15  ;;  %v1833_v55 = vperm.slane %v1369_v9, %v2916_v63  ;;  %2476 = vtanh.f32 %v598_v4  ;;  %v627_v32 = vadd.f32 %v3280_v51, %v313_v6  ;;  %v2469_v34 = vpop.eup %2468  ;;  %v628_v37 = vadd.f32 %v3283_v40, %v314_v61 }
 0x157   :  { %v1366_v59 = vpop.xlane.xlu0 %1365  ;;  %v2471_v43 = vpop.eup %2470  ;;  %v1517_v47 = vadd.f32 %v1139_v20, %v1138_v2  ;;  %2478 = vtanh.f32 %v629_v36  ;;  %v1520_v53 = vadd.f32 %v1141_v31, %v1140_v28  ;;  %v1142_v54 = vmul.f32 %v2467_v25, %v2642_v24 }
 0x158   :  { %v1831_v57 = vperm.slane %v1366_v59, %v2906_v46  ;;  %v1143_v19 = vmul.f32 %v2469_v34, %v2645_v27 }
 0x159   :  { %v1372_v48 = vpop.xlane.xlu2 %1371 }
 0x15a   :  { %v1832_v14 = vsel %vm1693_vm11, %v1831_v57, %v1830_v23  ;;  %v1835_v15 = vperm.slane %v1372_v48, %v2913_v56  ;;  %1512 = vadd.xlane.f32.xlu1 %v1511_v50  ;;  %v630_v23 = vadd.f32 %v3283_v40, %v316_v16  ;;  %v2473_v50 = vpop.eup %2472 }
 0x15b   :  { %v1834_v13 = vsel %vm1697_vm13, %v1833_v55, %v1832_v14  ;;  %v2475_v55 = vpop.eup %2474  ;;  %v1113_v8 = vmul.f32 %v2473_v50, %v2645_v27 }
 0x15c   :  { %v1836_v0 = vsel %vm1701_vm14, %v1835_v15, %v1834_v13  ;;  %1509 = vadd.xlane.f32.xlu0 %v1508_v58  ;;  %2480 = vtanh.f32 %v630_v23  ;;  %v2477_v40 = vpop.eup %2476  ;;  %v1112_v58 = vmul.f32 %v2471_v43, %v2642_v24  ;;  %v1114_v62 = vmul.f32 %v2475_v55, %v2642_v24 }
 0x15d   :  { %v1378_v38 = vpop.xlane.xlu1 %1377  ;;  %2482 = vtanh.f32 %v627_v32  ;;  %v2479_v48 = vpop.eup %2478  ;;  %v1115_v4 = vmul.f32 %v2477_v40, %v2645_v27 }
 0x15e   :  { %1515 = vadd.xlane.f32.xlu2 %v1514_v3  ;;  %v1839_v9 = vperm.slane %v1378_v38, %v2968_v33  ;;  %2484 = vtanh.f32 %v628_v37  ;;  %v1523_v3 = vadd.f32 %v1143_v19, %v1142_v54  ;;  %v1478_v16 = vadd.f32 %v1113_v8, %v1112_v58 }
 0x15f   :  { %v1375_v35 = vpop.xlane.xlu0 %1374  ;;  %v1146_v20 = vmul.f32 %v2479_v48, %v2642_v24 }
 0x160   :  { %v1837_v45 = vperm.slane %v1375_v35, %v2936_v29 }
 0x161   :  { %v1381_v52 = vpop.xlane.xlu2 %1380 }
 0x162   :  { %v1838_v51 = vsel %vm1705_vm15, %v1837_v45, %v1836_v0  ;;  %v1841_v59 = vperm.slane %v1381_v52, %v2964_v26  ;;  %1476 = vadd.xlane.f32.xlu1 %v1475_v41  ;;  %v2481_v5 = vpop.eup %2480  ;;  %v1481_v0 = vadd.f32 %v1115_v4, %v1114_v62 }
 0x163   :  { %v1840_v39 = vsel %vm1709_vm0, %v1839_v9, %v1838_v51  ;;  %v2483_v15 = vpop.eup %2482  ;;  %v1147_v61 = vmul.f32 %v2481_v5, %v2645_v27 }
 0x164   :  { %v1842_v57 = vsel %vm1713_vm12, %v1841_v59, %v1840_v39  ;;  %1518 = vadd.xlane.f32.xlu0 %v1517_v47  ;;  %v2485_v13 = vpop.eup %2484  ;;  %v1144_v38 = vmul.f32 %v2483_v15, %v2642_v24 }
 0x165   :  { %v1387_v60 = vpop.xlane.xlu1 %1386  ;;  %v1145_v28 = vmul.f32 %v2485_v13, %v2645_v27  ;;  %v1529_v41 = vadd.f32 %v1147_v61, %v1146_v20 }
 0x166   :  { %1521 = vadd.xlane.f32.xlu2 %v1520_v53  ;;  %v1845_v12 = vperm.slane %v1387_v60, %v2996_v22 }
 0x167   :  { %v1384_v14 = vpop.xlane.xlu0 %1383  ;;  %v1526_v35 = vadd.f32 %v1145_v28, %v1144_v38 }
 0x168   :  { %v1843_v1 = vperm.slane %v1384_v14, %v2992_v21 }
 0x169   :  { %v1390_v2 = vpop.xlane.xlu2 %1389 }
 0x16a   :  { %v1844_v6 = vsel %vm1717_vm3, %v1843_v1, %v1842_v57  ;;  %1524 = vadd.xlane.f32.xlu1 %v1523_v3  ;;  %v1847_v25 = vperm.slane %v1390_v2, %v2856_v49 }
 0x16b   :  { %v1846_v36 = vsel %vm1721_vm2, %v1845_v12, %v1844_v6 }
 0x16c   :  { %1479 = vadd.xlane.f32.xlu0 %v1478_v16  ;;  %v1943_v31 = vsel %vm3547_vm7, %v1846_v36, %v3344_v44  ;;  %vm3548_vm7 = vcmask 1045509  }
 0x16d   :  { %v1396_v23 = vpop.xlane.xlu1 %1395 }
 0x16e   :  { %1482 = vadd.xlane.f32.xlu2 %v1481_v0  ;;  %v1850_v32 = vperm.slane %v1396_v23, %v2870_v10 }
 0x16f   :  { %v1393_v34 = vpop.xlane.xlu0 %1392 }
 0x170   :  { %v1848_v9 = vperm.slane %v1393_v34, %v2881_v18 }
 0x171   :  { %v1399_v37 = vpop.xlane.xlu2 %1398 }
 0x172   :  { %v1849_v43 = vsel %vm1665_vm4, %v1848_v9, %v1847_v25  ;;  %v1852_v24 = vperm.slane %v1399_v37, %v2878_v17  ;;  %1530 = vadd.xlane.f32.xlu1 %v1529_v41 }
 0x173   :  { %v1851_v27 = vsel %vm1669_vm5, %v1850_v32, %v1849_v43 }
 0x174   :  { %v1853_v44 = vsel %vm1673_vm6, %v1852_v24, %v1851_v27  ;;  %1527 = vadd.xlane.f32.xlu0 %v1526_v35 }
 0x175   :  { %v1405_v45 = vpop.xlane.xlu1 %1404 }
 0x176   :  { %v1856_v47 = vperm.slane %v1405_v45, %v2890_v30 }
 0x177   :  { %v1402_v50 = vpop.xlane.xlu0 %1401 }
 0x178   :  { %v1854_v52 = vperm.slane %v1402_v50, %v2873_v11 }
 0x179   :  { %v1408_v53 = vpop.xlane.xlu2 %1407 }
 0x17a   :  { %v1855_v54 = vsel %vm3546_vm1, %v1854_v52, %v1853_v44  ;;  %v1858_v55 = vperm.slane %v1408_v53, %v2902_v42 }
 0x17b   :  { %v1857_v51 = vsel %vm1681_vm8, %v1856_v47, %v1855_v54 }
 0x17c   :  { %v1859_v59 = vsel %vm1685_vm9, %v1858_v55, %v1857_v51 }
 0x17d   :  { %v1414_v19 = vpop.xlane.xlu1 %1413 }
 0x17e   :  { %v1862_v40 = vperm.slane %v1414_v19, %v2906_v46 }
 0x17f   :  { %v1411_v39 = vpop.xlane.xlu0 %1410 }
 0x180   :  { %v1860_v57 = vperm.slane %v1411_v39, %v2898_v7 }
 0x181   :  { %v1417_v58 = vpop.xlane.xlu2 %1416 }
 0x182   :  { %v1861_v8 = vsel %vm1689_vm10, %v1860_v57, %v1859_v59  ;;  %v1864_v60 = vperm.slane %v1417_v58, %v2916_v63 }
 0x183   :  { %v1863_v48 = vsel %vm1693_vm11, %v1862_v40, %v1861_v8 }
 0x184   :  { %v1865_v3 = vsel %vm1697_vm13, %v1864_v60, %v1863_v48 }
 0x185   :  { %v1423_v62 = vpop.xlane.xlu1 %1422 }
 0x186   :  { %v1868_v4 = vperm.slane %v1423_v62, %v2936_v29 }
 0x187   :  { %v1420_v5 = vpop.xlane.xlu0 %1419 }
 0x188   :  { %v1866_v12 = vperm.slane %v1420_v5, %v2913_v56 }
 0x189   :  { %v1426_v14 = vpop.xlane.xlu2 %1425 }
 0x18a   :  { %v1867_v15 = vsel %vm1701_vm14, %v1866_v12, %v1865_v3  ;;  %v1870_v1 = vperm.slane %v1426_v14, %v2968_v33 }
 0x18b   :  { %v1869_v16 = vsel %vm1705_vm15, %v1868_v4, %v1867_v15 }
 0x18c   :  { %v1871_v13 = vsel %vm1709_vm0, %v1870_v1, %v1869_v16 }
 0x18d   :  { %v1432_v2 = vpop.xlane.xlu1 %1431 }
 0x18e   :  { %v1874_v6 = vperm.slane %v1432_v2, %v2992_v21 }
 0x18f   :  { %v1429_v0 = vpop.xlane.xlu0 %1428 }
 0x190   :  { %v1872_v20 = vperm.slane %v1429_v0, %v2964_v26 }
 0x191   :  { %v1435_v61 = vpop.xlane.xlu2 %1434 }
 0x192   :  { %v1873_v36 = vsel %vm1713_vm12, %v1872_v20, %v1871_v13  ;;  %v1876_v38 = vperm.slane %v1435_v61, %v2996_v22 }
 0x193   :  { %v1875_v28 = vsel %vm1717_vm3, %v1874_v6, %v1873_v36 }
 0x194   :  { %v1877_v23 = vsel %vm1721_vm2, %v1876_v38, %v1875_v28 }
 0x195   :  { %v3463_v25 = vsel %vm3548_vm7, %v1877_v23, %v1943_v31  ;;  %v1441_v41 = vpop.xlane.xlu1 %1440 }
 0x196   :  { %v1879_v32 = vperm.slane %v1441_v41, %v2881_v18 }
 0x197   :  { %v1438_v34 = vpop.xlane.xlu0 %1437 }
 0x198   :  { %v1878_v9 = vperm.slane %v1438_v34, %v2856_v49 }
 0x199   :  { %v1444_v35 = vpop.xlane.xlu2 %1443 }
 0x19a   :  { %v1880_v37 = vsel %vm1665_vm4, %v1879_v32, %v1878_v9  ;;  %v1881_v39 = vperm.slane %v1444_v35, %v2870_v10 }
 0x19c   :  { %v1882_v60 = vsel %vm1669_vm5, %v1881_v39, %v1880_v37 }
 0x19d   :  { %v1450_v43 = vpop.xlane.xlu1 %1449 }
 0x19e   :  { %v1885_v48 = vperm.slane %v1450_v43, %v2873_v11 }
 0x19f   :  { %v1447_v24 = vpop.xlane.xlu0 %1446 }
 0x1a0   :  { %v1883_v57 = vperm.slane %v1447_v24, %v2878_v17 }
 0x1a1   :  { %v1453_v27 = vpop.xlane.xlu2 %1452 }
 0x1a2   :  { %v1884_v3 = vsel %vm1673_vm6, %v1883_v57, %v1882_v60  ;;  %v1887_v12 = vperm.slane %v1453_v27, %v2890_v30 }
 0x1a3   :  { %v1886_v15 = vsel %vm3546_vm1, %v1885_v48, %v1884_v3 }
 0x1a5   :  { %v1459_v44 = vpop.xlane.xlu1 %1458 }
 0x1a7   :  { %v1456_v45 = vpop.xlane.xlu0 %1455 }
 0x1a8   :  { %v1889_v1 = vperm.slane %v1456_v45, %v2902_v42 }
 0x1a9   :  { %v1462_v47 = vpop.xlane.xlu2 %1461 }
 0x1aa   :  { %v1893_v38 = vperm.slane %v1462_v47, %v2906_v46 }
 0x1ad   :  { %v1468_v50 = vpop.xlane.xlu1 %1467 }
 0x1ae   :  { %v1897_v35 = vperm.slane %v1468_v50, %v2913_v56 }
 0x1af   :  { %v1465_v52 = vpop.xlane.xlu0 %1464 }
 0x1b0   :  { %v1895_v28 = vperm.slane %v1465_v52, %v2916_v63 }
 0x1b1   :  { %v1471_v53 = vpop.xlane.xlu2 %1470 }
 0x1b5   :  { %v1486_v31 = vpop.xlane.xlu1 %1485 }
 0x1b6   :  { %v1909_v62 = vperm.slane %v1486_v31, %v2856_v49  ;;  %v1888_v49 = vsel %vm1681_vm8, %v1887_v12, %v1886_v15 }
 0x1b7   :  { %v1474_v54 = vpop.xlane.xlu0 %1473 }
 0x1b8   :  { %v1901_v45 = vperm.slane %v1474_v54, %v2968_v33 }
 0x1b9   :  { %v1489_v55 = vpop.xlane.xlu2 %1488 }
 0x1ba   :  { %v1910_v4 = vperm.slane %v1489_v55, %v2881_v18  ;;  %v1891_v18 = vperm.slane %v1459_v44, %v2898_v7  ;;  %v1899_v44 = vperm.slane %v1471_v53, %v2936_v29 }
 0x1bc   :  { %v1911_v16 = vsel %vm1665_vm4, %v1910_v4, %v1909_v62  ;;  %vm3549_vm4 = vmmov %vm3546_vm1 }
 0x1bd   :  { %v1495_v51 = vpop.xlane.xlu1 %1494 }
 0x1be   :  { %v1914_v13 = vperm.slane %v1495_v51, %v2878_v17 }
 0x1bf   :  { %v1492_v59 = vpop.xlane.xlu0 %1491 }
 0x1c0   :  { %v1912_v5 = vperm.slane %v1492_v59, %v2870_v10  ;;  %v1890_v10 = vsel %vm1685_vm9, %v1889_v1, %v1888_v49 }
 0x1c1   :  { %v1498_v19 = vpop.xlane.xlu2 %1497  ;;  %v1892_v17 = vsel %vm1689_vm10, %v1891_v18, %v1890_v10 }
 0x1c2   :  { %v1913_v6 = vsel %vm1669_vm5, %v1912_v5, %v1911_v16  ;;  %v1916_v20 = vperm.slane %v1498_v19, %v2873_v11  ;;  %v1894_v11 = vsel %vm1693_vm11, %v1893_v38, %v1892_v17  ;;  %vm3550_vm5 = vcmask 1046534  }
 0x1c3   :  { %v1915_v61 = vsel %vm1673_vm6, %v1914_v13, %v1913_v6  ;;  %vm1946_vm6 = vcmask 1047559  }
 0x1c4   :  { %v1917_v41 = vsel %vm3549_vm4, %v1916_v20, %v1915_v61 }
 0x1c5   :  { %v1504_v40 = vpop.xlane.xlu1 %1503 }
 0x1c6   :  { %v1920_v32 = vperm.slane %v1504_v40, %v2902_v42 }
 0x1c7   :  { %v1501_v58 = vpop.xlane.xlu0 %1500 }
 0x1c8   :  { %v1918_v36 = vperm.slane %v1501_v58, %v2890_v30  ;;  %v1896_v30 = vsel %vm1697_vm13, %v1895_v28, %v1894_v11 }
 0x1c9   :  { %v1507_v8 = vpop.xlane.xlu2 %1506  ;;  %v1898_v42 = vsel %vm1701_vm14, %v1897_v35, %v1896_v30 }
 0x1ca   :  { %v1919_v34 = vsel %vm1681_vm8, %v1918_v36, %v1917_v41  ;;  %v1922_v37 = vperm.slane %v1507_v8, %v2898_v7  ;;  %v1900_v55 = vsel %vm1705_vm15, %v1899_v44, %v1898_v42 }
 0x1cb   :  { %v1921_v24 = vsel %vm1685_vm9, %v1920_v32, %v1919_v34 }
 0x1cc   :  { %v1923_v47 = vsel %vm1689_vm10, %v1922_v37, %v1921_v24 }
 0x1cd   :  { %v1513_v14 = vpop.xlane.xlu1 %1512 }
 0x1ce   :  { %v1926_v52 = vperm.slane %v1513_v14, %v2916_v63 }
 0x1cf   :  { %v1510_v2 = vpop.xlane.xlu0 %1509 }
 0x1d0   :  { %v1924_v27 = vperm.slane %v1510_v2, %v2906_v46  ;;  %v1902_v46 = vsel %vm1709_vm0, %v1901_v45, %v1900_v55 }
 0x1d1   :  { %v1516_v0 = vpop.xlane.xlu2 %1515 }
 0x1d2   :  { %v1925_v7 = vsel %vm1693_vm11, %v1924_v27, %v1923_v47  ;;  %v1928_v53 = vperm.slane %v1516_v0, %v2913_v56 }
 0x1d3   :  { %v1927_v54 = vsel %vm1697_vm13, %v1926_v52, %v1925_v7 }
 0x1d4   :  { %v1929_v58 = vsel %vm1701_vm14, %v1928_v53, %v1927_v54 }
 0x1d5   :  { %v1477_v23 = vpop.xlane.xlu1 %1476 }
 0x1d6   :  { %v1903_v50 = vperm.slane %v1477_v23, %v2964_v26 }
 0x1d7   :  { %v1519_v9 = vpop.xlane.xlu0 %1518 }
 0x1d8   :  { %v1904_v19 = vsel %vm1713_vm12, %v1903_v50, %v1902_v46  ;;  %v1930_v63 = vperm.slane %v1519_v9, %v2936_v29 }
 0x1d9   :  { %v1522_v43 = vpop.xlane.xlu2 %1521 }
 0x1da   :  { %v1932_v8 = vperm.slane %v1522_v43, %v2968_v33  ;;  %v1931_v56 = vsel %vm1705_vm15, %v1930_v63, %v1929_v58 }
 0x1dc   :  { %v1933_v5 = vsel %vm1709_vm0, %v1932_v8, %v1931_v56 }
 0x1dd   :  { %v1525_v31 = vpop.xlane.xlu1 %1524 }
 0x1de   :  { %v1934_v48 = vperm.slane %v1525_v31, %v2964_v26 }
 0x1df   :  { %v1480_v51 = vpop.xlane.xlu0 %1479 }
 0x1e0   :  { %v1905_v59 = vperm.slane %v1480_v51, %v2992_v21  ;;  %v1935_v33 = vsel %vm1713_vm12, %v1934_v48, %v1933_v5 }
 0x1e1   :  { %v1483_v40 = vpop.xlane.xlu2 %1482 }
 0x1e2   :  { %v1906_v39 = vsel %vm1717_vm3, %v1905_v59, %v1904_v19  ;;  %v1907_v57 = vperm.slane %v1483_v40, %v2996_v22 }
 0x1e4   :  { %v1908_v60 = vsel %vm1721_vm2, %v1907_v57, %v1906_v39 }
 0x1e5   :  { %v1531_v3 = vpop.xlane.xlu1 %1530  ;;  %v1945_v62 = vsel %vm3550_vm5, %v1908_v60, %v3463_v25 }
 0x1e6   :  { %v1938_v4 = vperm.slane %v1531_v3, %v2996_v22 }
 0x1e7   :  { %v1528_v29 = vpop.xlane.xlu0 %1527 }
 0x1e8   :  { %v1936_v12 = vperm.slane %v1528_v29, %v2992_v21 }
 0x1ea   :  { %v1937_v26 = vsel %vm1717_vm3, %v1936_v12, %v1935_v33 }
 0x1eb   :  { %v1939_v25 = vsel %vm1721_vm2, %v1938_v4, %v1937_v26 }
 0x1ec   :  { %v1947_v22 = vsel %vm1946_vm6, %v1939_v25, %v1945_v62 }
 0x1ed   :  { %1949 = vst [vmem:[#allocation8] sm:$0xff] %v1947_v22 }
 0x1ee   :  { %1960 = dma.vmem_to_hbm [thread:$0]  %s1956_s2, 128, %s1958_s30, [#allocation4]  }
 0x1ef   :  { %2588 = dma.done.wait [#allocation4], 128  }
 0x1f0   :  { %2589 = vsyncadd [#allocation4], 4294967168 }
 0x1f1   :  { %1965 = vsyncpa [#allocation3], 1 }
 0x1f2   :  { %1966 = vsyncpa [#allocation6], 1 }
 0x1f3   :  { %1967 = vsyncpa [#allocation4], 1 }

</bundles_post_ra>
